<compile_context>
chip_gen: v7x
topology: tpu7x:2x2x1
jax: 0.10.0
libtpu: 0.0.40
codegen_flags: <defaults>
</compile_context>

<pallas_src>
import functools

import jax
import jax.numpy as jnp
from jax.experimental import pallas as pl
from jax.experimental.pallas import tpu as pltpu


def _layernorm(x, gamma, beta, eps=1e-6):
    mu = jnp.mean(x, axis=-1, keepdims=True)
    var = jnp.mean((x - mu) ** 2, axis=-1, keepdims=True)
    return (x - mu) * jax.lax.rsqrt(var + eps) * gamma + beta


def _fused_sab_kernel(e_ref, mask_ref, wbig_ref, w2_ref, vec_ref, o_ref,
                      *, n_heads, mxu_dtype):
    layer = pl.program_id(1)

    G, D = e_ref.shape                      # G = NB * L flattened rows of this batch block
    NB, L, _ = mask_ref.shape
    c = D // n_heads

    # Layer 0: seed the resident activation (output block doubles as the layer accumulator).
    @pl.when(layer == 0)
    def _():
        o_ref[...] = e_ref[...]

    x = o_ref[...]                          # (G, D) f32, resident across the layer axis

    wbig = wbig_ref[0]                      # (D, 8D) = [w_QKV | w_O | w_1], mxu_dtype
    w2 = w2_ref[0]                          # (Di, D)
    vecs = vec_ref[0]                       # (8, Di) f32 packed per-layer vectors
    g1, be1 = vecs[0:1, :D], vecs[1:2, :D]
    g2, be2 = vecs[2:3, :D], vecs[3:4, :D]
    bb2, bb1 = vecs[4:5, :D], vecs[5:6, :]

    def mm(a, b):                           # weights already in mxu_dtype; accumulate in f32
        return jnp.dot(a.astype(mxu_dtype), b, preferred_element_type=jnp.float32)

    # ------------- multi-head self attention (1/sqrt(head_dim) folded into Q weights) -------------
    qkv = mm(x, wbig[:, :3 * D])                                   # (G, 3D)
    q3 = qkv[:, :D].reshape(NB, L, D)
    k3 = qkv[:, D:2 * D].reshape(NB, L, D)
    v3 = qkv[:, 2 * D:].reshape(NB, L, D)

    mb = mask_ref[...]                                             # (NB, L, L) 1.0 keep / 0.0 drop
    neg = (mb - 1.0) * 1e30                                        # additive mask, applied BEFORE max

    # TODO(synk): for very long sets (NB*L beyond a few hundred) tile the softmax over keys
    # (online softmax) instead of materializing full (NB, L, L) scores per head.
    ctx = []
    for h in range(n_heads):                                       # static unroll; lane slices only
        sl = slice(h * c, (h + 1) * c)
        qh = q3[:, :, sl].astype(mxu_dtype)
        kh = k3[:, :, sl].astype(mxu_dtype)
        vh = v3[:, :, sl].astype(mxu_dtype)
        s = jnp.einsum('blc,bmc->blm', qh, kh,
                       preferred_element_type=jnp.float32)         # (NB, L, L)
        s = s + neg                                                # mask before max (no underflow)
        s = s - jnp.max(s, axis=-1, keepdims=True)
        p = jnp.exp(s) * mb
        den = jnp.sum(p, axis=-1, keepdims=True)
        r = pl.reciprocal(den, approx=True)                        # EUP slot
        r = r * (2.0 - den * r)                                    # one Newton step -> ~f32 exact
        attn = jnp.where(den > 0.0, p * r, 0.0)                    # fully-masked rows -> 0 (torch NaN->0)
        ctx.append(jnp.einsum('blm,bmc->blc', attn.astype(mxu_dtype), vh,
                              preferred_element_type=jnp.float32))
    cat = jnp.concatenate(ctx, axis=-1).reshape(G, D)              # (G, D)
    sub = mm(cat, wbig[:, 3 * D:4 * D])                            # finishing linear

    # ------------- residual + LayerNorm 1 -------------
    x = _layernorm(x + sub, g1, be1)

    # ------------- feed forward (1x1 conv == dense), LeakyReLU(0.2) -------------
    hdn = mm(x, wbig[:, 4 * D:]) + bb1
    hdn = jnp.where(hdn >= 0.0, hdn, 0.2 * hdn)
    sub = mm(hdn, w2) + bb2

    # ------------- residual + LayerNorm 2 -------------
    o_ref[...] = _layernorm(x + sub, g2, be2)


def _pick_batch_block(B, L, max_rows=256):
    """Largest NB dividing B with NB*L sublane-aligned and <= max_rows, preferring nblk >= 2 (v7x)."""
    divisors = [nb for nb in range(1, B + 1) if B % nb == 0]

    def ok(nb):  # (8,128) sublane rule only matters for partial blocks
        return (nb * L) % 8 == 0 or B // nb == 1

    good = [nb for nb in divisors if ok(nb) and nb * L <= max_rows and B // nb >= 2]
    if good:
        return max(good)
    anyok = [nb for nb in divisors if ok(nb)]
    small = [nb for nb in anyok if nb * L <= max_rows]
    if small:
        return max(small)
    return min(anyok) if anyok else B


def set_encoder_pallas(e_bdl, mask_bool, params, *, n_heads, batch_block=None,
                       mxu_dtype=jnp.bfloat16):
    """e_bdl: (B, n_units, length) like PyTorch; mask_bool: (B, L, L) bool.

    mxu_dtype is the matmul-input dtype (accumulation is always f32). bf16 is the fast path on
    v5e/v6e/v7x MXUs; pass jnp.float32 for exact-math validation.
    """
    B, D, L = e_bdl.shape
    n_layers = len(params)
    assert D % n_heads == 0
    Di = 4 * D
    c = D // n_heads
    scale = 1.0 / float(c) ** 0.5

    NB = _pick_batch_block(B, L) if batch_block is None else batch_block
    assert B % NB == 0, "batch must be divisible by batch_block"
    nblk = B // NB
    G = NB * L

    # Lane-dense activation slab (B*L, D): no in-kernel reshape at load or writeback.
    x = jnp.transpose(e_bdl, (0, 2, 1)).reshape(B * L, D).astype(jnp.float32)
    mb = mask_bool.astype(jnp.float32)                             # (B, L, L)

    def stack(name):
        return jnp.stack([p[name] for p in params])

    wqkv = stack('wqkv')                                           # (nl, D, 3D)
    wqkv = wqkv.at[:, :, :D].multiply(scale)                       # fold 1/sqrt(c) into Q
    # Consolidate the three D-row weight matrices into one DMA stream: [w_QKV | w_O | w_1].
    wbig = jnp.concatenate([wqkv, stack('wo'), stack('w1')], axis=2).astype(mxu_dtype)  # (nl, D, 8D)
    w2 = stack('w2').astype(mxu_dtype)                             # (nl, Di, D)

    # Pack the six small per-layer vectors into one padded (nl, 8, Di) f32 slab.
    def pad_d(a):                                                  # (nl, 1, D) -> (nl, 1, Di)
        return jnp.pad(a, ((0, 0), (0, 0), (0, Di - D)))
    zrow = jnp.zeros((n_layers, 1, Di), jnp.float32)
    vecs = jnp.concatenate([pad_d(stack('g1')), pad_d(stack('be1')),
                            pad_d(stack('g2')), pad_d(stack('be2')),
                            pad_d(stack('bb2')), stack('bb1'),
                            zrow, zrow], axis=1).astype(jnp.float32)   # (nl, 8, Di)

    kernel = functools.partial(_fused_sab_kernel, n_heads=n_heads, mxu_dtype=mxu_dtype)

    grid_spec = pltpu.PrefetchScalarGridSpec(
        num_scalar_prefetch=0,
        grid=(nblk, n_layers),
        in_specs=[
            pl.BlockSpec((G, D), lambda b, l: (b, 0)),             # activation slab (fetched once/block)
            pl.BlockSpec((NB, L, L), lambda b, l: (b, 0, 0)),      # per-sample mask (once/block)
            # TODO(synk): on v5e, hoist all layers' weights into VMEM once (pl.ANY + manual copy)
            # when n_layers*12*D*D*itemsize fits, to avoid re-streaming them nblk times.
            pl.BlockSpec((1, D, 8 * D), lambda b, l: (l, 0, 0)),   # [w_QKV | w_O | w_1] per layer
            pl.BlockSpec((1, Di, D), lambda b, l: (l, 0, 0)),      # w_2 per layer
            pl.BlockSpec((1, 8, Di), lambda b, l: (l, 0, 0)),      # packed LN gammas/betas + biases
        ],
        out_specs=pl.BlockSpec((G, D), lambda b, l: (b, 0)),       # resident activation + final output
    )

    itm = jnp.dtype(mxu_dtype).itemsize
    # VMEM budget from the actual buffer set: double-buffered tiles + in-kernel working set.
    tiles = (2 * 2 * G * D * 4                     # activation in + out (double buffered)
             + 2 * NB * L * L * 4                  # mask
             + 2 * (8 * D * D + Di * D) * itm      # weight streams
             + 2 * 8 * Di * 4)                     # vector slab
    work = 4 * (G * 3 * D + G * Di + 3 * G * D + 6 * NB * L * L)
    vmem_limit = int(min(max(2 * (tiles + work), 32 * 1024 * 1024), 64 * 1024 * 1024))

    flops_layer = (2 * B * L * D * 3 * D + 2 * B * L * D * D + 4 * B * L * D * Di
                   + 4 * B * L * L * D)
    cost = pl.CostEstimate(
        flops=int(n_layers * flops_layer),
        transcendentals=int(n_layers * (B * n_heads * L * L + B * n_heads * L + 2 * B * L)),
        bytes_accessed=int(4 * (2 * B * L * D + B * L * L)
                           + nblk * n_layers * ((8 * D * D + Di * D) * itm + 8 * Di * 4)),
    )

    out = pl.pallas_call(
        kernel,
        out_shape=jax.ShapeDtypeStruct((B * L, D), jnp.float32),
        grid_spec=grid_spec,
        compiler_params=pltpu.CompilerParams(
            dimension_semantics=("parallel", "arbitrary"),
            vmem_limit_bytes=vmem_limit,
        ),
        cost_estimate=cost,
    )(x, mb, wbig, w2, vecs)

    return jnp.transpose(out.reshape(B, L, D), (0, 2, 1))          # back to (B, n_units, L)


# ---------------- plain-JAX reference (for correctness check) ----------------
def set_encoder_ref(e_bdl, mask_bool, params, *, n_heads):
    x = jnp.transpose(e_bdl, (0, 2, 1)).astype(jnp.float32)
    m = mask_bool.astype(jnp.float32)
    for p in params:
        B, L, D = x.shape
        c = D // n_heads
        scale = 1.0 / float(c) ** 0.5
        qkv = x @ p['wqkv']
        q, k, v = qkv[..., :D], qkv[..., D:2 * D], qkv[..., 2 * D:]
        qh = q.reshape(B, L, n_heads, c).transpose(0, 2, 1, 3)
        kh = k.reshape(B, L, n_heads, c).transpose(0, 2, 1, 3)
        vh = v.reshape(B, L, n_heads, c).transpose(0, 2, 1, 3)
        A = jnp.einsum('bhqc,bhkc->bhqk', qh, kh) * scale
        mb = m[:, None]
        A = jnp.where(mb > 0, A, -1e30)
        A = A - A.max(-1, keepdims=True)
        pe = jnp.exp(A) * mb
        den = pe.sum(-1, keepdims=True)
        attn = jnp.where(den > 0, pe / den, 0.0)
        ch = jnp.einsum('bhqk,bhkc->bhqc', attn, vh)
        C = ch.transpose(0, 2, 1, 3).reshape(B, L, D)
        x = x + C @ p['wo']
        mu = x.mean(-1, keepdims=True)
        var = ((x - mu) ** 2).mean(-1, keepdims=True)
        x = (x - mu) / jnp.sqrt(var + 1e-6) * p['g1'] + p['be1']
        h = x @ p['w1'] + p['bb1']
        h = jnp.where(h >= 0, h, 0.2 * h)
        x = x + (h @ p['w2'] + p['bb2'])
        mu = x.mean(-1, keepdims=True)
        var = ((x - mu) ** 2).mean(-1, keepdims=True)
        x = (x - mu) / jnp.sqrt(var + 1e-6) * p['g2'] + p['be2']
    return jnp.transpose(x, (0, 2, 1))


def init_params(key, n_units, n_layers):
    params = []
    D, Di = n_units, 4 * n_units
    for _ in range(n_layers):
        key, *ks = jax.random.split(key, 5)
        params.append(dict(
            wqkv=(jax.random.normal(ks[0], (D, 3 * D), jnp.float32) * 0.05),
            wo=(jax.random.normal(ks[1], (D, D), jnp.float32) * 0.05),
            g1=jnp.ones((1, D), jnp.float32),
            be1=jnp.zeros((1, D), jnp.float32),
            w1=(jax.random.normal(ks[2], (D, Di), jnp.float32) * 0.05),
            bb1=jnp.zeros((1, Di), jnp.float32),
            w2=(jax.random.normal(ks[3], (Di, D), jnp.float32) * 0.05),
            bb2=jnp.zeros((1, D), jnp.float32),
            g2=jnp.ones((1, D), jnp.float32),
            be2=jnp.zeros((1, D), jnp.float32),
        ))
    return params


if __name__ == "__main__":
    B, D, L = 2, 32, 8          # batch, n_units, set length
    n_heads, n_layers = 8, 2

    key = jax.random.PRNGKey(0)
    k_e, k_p = jax.random.split(key)

    e = jax.random.normal(k_e, (B, D, L), jnp.float32)       # PyTorch layout (B, n_units, length)
    # mask: element j of batch b is valid if j < valid_len[b]; broadcast to (B, L, L)
    valid_len = jnp.array([L, L - 3], jnp.int32)
    key_valid = (jnp.arange(L)[None, :] < valid_len[:, None])        # (B, L)
    mask = key_valid[:, None, :] & key_valid[:, :, None]             # (B, L, L) bool

    params = init_params(k_p, D, n_layers)
    ref = set_encoder_ref(e, mask, params, n_heads=n_heads)

    # Exact-math path (f32 MXU inputs): tight check against the reference.
    out_f32 = set_encoder_pallas(e, mask, params, n_heads=n_heads, mxu_dtype=jnp.float32)
    out_f32 = jax.block_until_ready(out_f32)
    assert out_f32.shape == (B, D, L)
    assert jnp.allclose(out_f32, ref, atol=1e-4, rtol=1e-4), "f32 mismatch vs reference"

    # Performance default (bf16 MXU inputs, f32 accumulation): loose check.
    out_bf16 = set_encoder_pallas(e, mask, params, n_heads=n_heads)
    out_bf16 = jax.block_until_ready(out_bf16)
    assert out_bf16.shape == (B, D, L)
    assert jnp.allclose(out_bf16, ref, atol=5e-2, rtol=5e-2), "bf16 mismatch vs reference"

    print("KERNEL_OK")
</pallas_src>

<mosaic_0001>
module attributes {stable_mosaic.version = 11 : i64} {
  func.func @_fused_sab_kernel(%arg0: i32, %arg1: i32, %arg2: memref<8x32xf32, #tpu.memory_space<vmem>>, %arg3: memref<1x8x8xf32, #tpu.memory_space<vmem>>, %arg4: memref<1x32x256xf32, #tpu.memory_space<vmem>>, %arg5: memref<1x128x32xf32, #tpu.memory_space<vmem>>, %arg6: memref<1x8x128xf32, #tpu.memory_space<vmem>>, %arg7: memref<8x32xf32, #tpu.memory_space<vmem>>) attributes {dimension_semantics = [#tpu.dimension_semantics<parallel>, #tpu.dimension_semantics<arbitrary>], iteration_bounds = array<i64: 2, 2>, scalar_prefetch = 0 : i64, scratch_operands = 0 : i64, tpu.core_type = #tpu.core_type<tc>, window_params = [{transform_indices = @transform_0, window_bounds = array<i64: 8, 32>}, {transform_indices = @transform_1, window_bounds = array<i64: 1, 8, 8>}, {transform_indices = @transform_2, window_bounds = array<i64: 1, 32, 256>}, {transform_indices = @transform_3, window_bounds = array<i64: 1, 128, 32>}, {transform_indices = @transform_4, window_bounds = array<i64: 1, 8, 128>}, {transform_indices = @transform_5, window_bounds = array<i64: 8, 32>}]} {
    %c0_i32 = arith.constant 0 : i32
    %0 = arith.cmpi eq, %arg1, %c0_i32 : i32
    %1 = arith.extui %0 : i1 to i32
    %c0_i32_0 = arith.constant 0 : i32
    %2 = arith.cmpi ne, %1, %c0_i32_0 : i32
    scf.if %2 {
      %c0_89 = arith.constant 0 : index
      %c0_90 = arith.constant 0 : index
      %308 = vector.load %arg2[%c0_89, %c0_90] : memref<8x32xf32, #tpu.memory_space<vmem>>, vector<8x32xf32>
      %c0_91 = arith.constant 0 : index
      %c0_92 = arith.constant 0 : index
      %309 = vector.load %arg7[%c0_91, %c0_92] : memref<8x32xf32, #tpu.memory_space<vmem>>, vector<8x32xf32>
      tpu.vector_store %arg7[%c0_91, %c0_92], %308 {strides = array<i32>} : memref<8x32xf32, #tpu.memory_space<vmem>>, vector<8x32xf32>,
    } else {
    }
    %c0 = arith.constant 0 : index
    %c0_1 = arith.constant 0 : index
    %3 = vector.load %arg7[%c0, %c0_1] : memref<8x32xf32, #tpu.memory_space<vmem>>, vector<8x32xf32>
    %c0_2 = arith.constant 0 : index
    %c0_3 = arith.constant 0 : index
    %c0_4 = arith.constant 0 : index
    %4 = vector.load %arg4[%c0_2, %c0_3, %c0_4] : memref<1x32x256xf32, #tpu.memory_space<vmem>>, vector<1x32x256xf32>
    %5 = vector.shape_cast %4 : vector<1x32x256xf32> to vector<32x256xf32>
    %c0_5 = arith.constant 0 : index
    %c0_6 = arith.constant 0 : index
    %c0_7 = arith.constant 0 : index
    %6 = vector.load %arg5[%c0_5, %c0_6, %c0_7] : memref<1x128x32xf32, #tpu.memory_space<vmem>>, vector<1x128x32xf32>
    %7 = vector.shape_cast %6 : vector<1x128x32xf32> to vector<128x32xf32>
    %c0_8 = arith.constant 0 : index
    %c0_9 = arith.constant 0 : index
    %c0_10 = arith.constant 0 : index
    %8 = vector.load %arg6[%c0_8, %c0_9, %c0_10] : memref<1x8x128xf32, #tpu.memory_space<vmem>>, vector<1x8x128xf32>
    %9 = vector.shape_cast %8 : vector<1x8x128xf32> to vector<8x128xf32>
    %10 = vector.extract_strided_slice %9 {offsets = [0, 0], sizes = [1, 32], strides = [1, 1]} : vector<8x128xf32> to vector<1x32xf32>
    %11 = vector.extract_strided_slice %9 {offsets = [1, 0], sizes = [1, 32], strides = [1, 1]} : vector<8x128xf32> to vector<1x32xf32>
    %12 = vector.extract_strided_slice %9 {offsets = [2, 0], sizes = [1, 32], strides = [1, 1]} : vector<8x128xf32> to vector<1x32xf32>
    %13 = vector.extract_strided_slice %9 {offsets = [3, 0], sizes = [1, 32], strides = [1, 1]} : vector<8x128xf32> to vector<1x32xf32>
    %14 = vector.extract_strided_slice %9 {offsets = [4, 0], sizes = [1, 32], strides = [1, 1]} : vector<8x128xf32> to vector<1x32xf32>
    %15 = vector.extract_strided_slice %9 {offsets = [5, 0], sizes = [1, 128], strides = [1, 1]} : vector<8x128xf32> to vector<1x128xf32>
    %16 = vector.extract_strided_slice %5 {offsets = [0, 0], sizes = [32, 96], strides = [1, 1]} : vector<32x256xf32> to vector<32x96xf32>
    %cst = arith.constant dense<0.000000e+00> : vector<8x96xf32>
    %17 = tpu.matmul %3, %16, %cst {dimension_numbers = #tpu.dot_dimension_numbers<[1], [0], [0], [1], [0, 0, 1, 1], [], []>} : vector<8x32xf32>, vector<32x96xf32>, vector<8x96xf32> -> vector<8x96xf32>
    %18 = vector.extract_strided_slice %17 {offsets = [0, 0], sizes = [8, 32], strides = [1, 1]} : vector<8x96xf32> to vector<8x32xf32>
    %19 = vector.shape_cast %18 : vector<8x32xf32> to vector<1x8x32xf32>
    %20 = vector.extract_strided_slice %17 {offsets = [0, 32], sizes = [8, 32], strides = [1, 1]} : vector<8x96xf32> to vector<8x32xf32>
    %21 = vector.shape_cast %20 : vector<8x32xf32> to vector<1x8x32xf32>
    %22 = vector.extract_strided_slice %17 {offsets = [0, 64], sizes = [8, 32], strides = [1, 1]} : vector<8x96xf32> to vector<8x32xf32>
    %23 = vector.shape_cast %22 : vector<8x32xf32> to vector<1x8x32xf32>
    %c0_11 = arith.constant 0 : index
    %c0_12 = arith.constant 0 : index
    %c0_13 = arith.constant 0 : index
    %24 = vector.load %arg3[%c0_11, %c0_12, %c0_13] : memref<1x8x8xf32, #tpu.memory_space<vmem>>, vector<1x8x8xf32>
    %cst_14 = arith.constant 1.000000e+00 : f32
    %25 = vector.broadcast %cst_14 : f32 to vector<1x8x8xf32>
    %26 = arith.subf %24, %25 : vector<1x8x8xf32>
    %cst_15 = arith.constant 1.000000e+30 : f32
    %27 = vector.broadcast %cst_15 : f32 to vector<1x8x8xf32>
    %28 = arith.mulf %26, %27 : vector<1x8x8xf32>
    %29 = vector.extract_strided_slice %19 {offsets = [0, 0, 0], sizes = [1, 8, 4], strides = [1, 1, 1]} : vector<1x8x32xf32> to vector<1x8x4xf32>
    %30 = vector.extract_strided_slice %21 {offsets = [0, 0, 0], sizes = [1, 8, 4], strides = [1, 1, 1]} : vector<1x8x32xf32> to vector<1x8x4xf32>
    %31 = vector.extract_strided_slice %23 {offsets = [0, 0, 0], sizes = [1, 8, 4], strides = [1, 1, 1]} : vector<1x8x32xf32> to vector<1x8x4xf32>
    "tpu.trace_start"() <{level = 10 : i32, message = "blc,bmc->blm"}> : () -> ()
    %cst_16 = arith.constant dense<0.000000e+00> : vector<1x8x8xf32>
    %32 = tpu.matmul %29, %30, %cst_16 {dimension_numbers = #tpu.dot_dimension_numbers<[2], [2], [1], [1], [0, 0, 0, 1, 1, 1], [0], [0]>} : vector<1x8x4xf32>, vector<1x8x4xf32>, vector<1x8x8xf32> -> vector<1x8x8xf32>
    "tpu.trace_stop"() : () -> ()
    %33 = arith.addf %32, %28 : vector<1x8x8xf32>
    %cst_17 = arith.constant dense<0xFF800000> : vector<1x8xf32>
    %34 = vector.multi_reduction <maximumf>, %33, %cst_17 [2] : vector<1x8x8xf32> to vector<1x8xf32>
    %35 = vector.shape_cast %34 : vector<1x8xf32> to vector<1x8x1xf32>
    %36 = vector.broadcast %35 : vector<1x8x1xf32> to vector<1x8x8xf32>
    %37 = arith.subf %33, %36 : vector<1x8x8xf32>
    %38 = math.exp %37 : vector<1x8x8xf32>
    %39 = arith.mulf %38, %24 : vector<1x8x8xf32>
    %cst_18 = arith.constant dense<0.000000e+00> : vector<1x8xf32>
    %40 = vector.multi_reduction <add>, %39, %cst_18 [2] : vector<1x8x8xf32> to vector<1x8xf32>
    %41 = vector.shape_cast %40 : vector<1x8xf32> to vector<1x8x1xf32>
    %42 = tpu.reciprocal %41 {approx = true} : vector<1x8x1xf32> -> vector<1x8x1xf32>
    %43 = arith.mulf %41, %42 : vector<1x8x1xf32>
    %cst_19 = arith.constant 2.000000e+00 : f32
    %44 = vector.broadcast %cst_19 : f32 to vector<1x8x1xf32>
    %45 = arith.subf %44, %43 : vector<1x8x1xf32>
    %46 = arith.mulf %42, %45 : vector<1x8x1xf32>
    %cst_20 = arith.constant 0.000000e+00 : f32
    %47 = vector.broadcast %cst_20 : f32 to vector<1x8x1xf32>
    %48 = arith.cmpf ogt, %41, %47 : vector<1x8x1xf32>
    %49 = vector.broadcast %46 : vector<1x8x1xf32> to vector<1x8x8xf32>
    %50 = arith.mulf %39, %49 : vector<1x8x8xf32>
    %cst_21 = arith.constant 0.000000e+00 : f32
    %51 = vector.shape_cast %48 : vector<1x8x1xi1> to vector<1x8x1xi1>
    %52 = vector.broadcast %51 : vector<1x8x1xi1> to vector<1x8x8xi1>
    %53 = vector.broadcast %cst_21 : f32 to vector<1x8x8xf32>
    %54 = arith.select %52, %50, %53 : vector<1x8x8xi1>, vector<1x8x8xf32>
    "tpu.trace_start"() <{level = 10 : i32, message = "blm,bmc->blc"}> : () -> ()
    %cst_22 = arith.constant dense<0.000000e+00> : vector<1x8x4xf32>
    %55 = tpu.matmul %54, %31, %cst_22 {dimension_numbers = #tpu.dot_dimension_numbers<[2], [1], [1], [2], [0, 0, 0, 1, 1, 2], [0], [0]>} : vector<1x8x8xf32>, vector<1x8x4xf32>, vector<1x8x4xf32> -> vector<1x8x4xf32>
    "tpu.trace_stop"() : () -> ()
    %56 = vector.extract_strided_slice %19 {offsets = [0, 0, 4], sizes = [1, 8, 4], strides = [1, 1, 1]} : vector<1x8x32xf32> to vector<1x8x4xf32>
    %57 = vector.extract_strided_slice %21 {offsets = [0, 0, 4], sizes = [1, 8, 4], strides = [1, 1, 1]} : vector<1x8x32xf32> to vector<1x8x4xf32>
    %58 = vector.extract_strided_slice %23 {offsets = [0, 0, 4], sizes = [1, 8, 4], strides = [1, 1, 1]} : vector<1x8x32xf32> to vector<1x8x4xf32>
    "tpu.trace_start"() <{level = 10 : i32, message = "blc,bmc->blm"}> : () -> ()
    %cst_23 = arith.constant dense<0.000000e+00> : vector<1x8x8xf32>
    %59 = tpu.matmul %56, %57, %cst_23 {dimension_numbers = #tpu.dot_dimension_numbers<[2], [2], [1], [1], [0, 0, 0, 1, 1, 1], [0], [0]>} : vector<1x8x4xf32>, vector<1x8x4xf32>, vector<1x8x8xf32> -> vector<1x8x8xf32>
    "tpu.trace_stop"() : () -> ()
    %60 = arith.addf %59, %28 : vector<1x8x8xf32>
    %cst_24 = arith.constant dense<0xFF800000> : vector<1x8xf32>
    %61 = vector.multi_reduction <maximumf>, %60, %cst_24 [2] : vector<1x8x8xf32> to vector<1x8xf32>
    %62 = vector.shape_cast %61 : vector<1x8xf32> to vector<1x8x1xf32>
    %63 = vector.broadcast %62 : vector<1x8x1xf32> to vector<1x8x8xf32>
    %64 = arith.subf %60, %63 : vector<1x8x8xf32>
    %65 = math.exp %64 : vector<1x8x8xf32>
    %66 = arith.mulf %65, %24 : vector<1x8x8xf32>
    %cst_25 = arith.constant dense<0.000000e+00> : vector<1x8xf32>
    %67 = vector.multi_reduction <add>, %66, %cst_25 [2] : vector<1x8x8xf32> to vector<1x8xf32>
    %68 = vector.shape_cast %67 : vector<1x8xf32> to vector<1x8x1xf32>
    %69 = tpu.reciprocal %68 {approx = true} : vector<1x8x1xf32> -> vector<1x8x1xf32>
    %70 = arith.mulf %68, %69 : vector<1x8x1xf32>
    %cst_26 = arith.constant 2.000000e+00 : f32
    %71 = vector.broadcast %cst_26 : f32 to vector<1x8x1xf32>
    %72 = arith.subf %71, %70 : vector<1x8x1xf32>
    %73 = arith.mulf %69, %72 : vector<1x8x1xf32>
    %cst_27 = arith.constant 0.000000e+00 : f32
    %74 = vector.broadcast %cst_27 : f32 to vector<1x8x1xf32>
    %75 = arith.cmpf ogt, %68, %74 : vector<1x8x1xf32>
    %76 = vector.broadcast %73 : vector<1x8x1xf32> to vector<1x8x8xf32>
    %77 = arith.mulf %66, %76 : vector<1x8x8xf32>
    %cst_28 = arith.constant 0.000000e+00 : f32
    %78 = vector.shape_cast %75 : vector<1x8x1xi1> to vector<1x8x1xi1>
    %79 = vector.broadcast %78 : vector<1x8x1xi1> to vector<1x8x8xi1>
    %80 = vector.broadcast %cst_28 : f32 to vector<1x8x8xf32>
    %81 = arith.select %79, %77, %80 : vector<1x8x8xi1>, vector<1x8x8xf32>
    "tpu.trace_start"() <{level = 10 : i32, message = "blm,bmc->blc"}> : () -> ()
    %cst_29 = arith.constant dense<0.000000e+00> : vector<1x8x4xf32>
    %82 = tpu.matmul %81, %58, %cst_29 {dimension_numbers = #tpu.dot_dimension_numbers<[2], [1], [1], [2], [0, 0, 0, 1, 1, 2], [0], [0]>} : vector<1x8x8xf32>, vector<1x8x4xf32>, vector<1x8x4xf32> -> vector<1x8x4xf32>
    "tpu.trace_stop"() : () -> ()
    %83 = vector.extract_strided_slice %19 {offsets = [0, 0, 8], sizes = [1, 8, 4], strides = [1, 1, 1]} : vector<1x8x32xf32> to vector<1x8x4xf32>
    %84 = vector.extract_strided_slice %21 {offsets = [0, 0, 8], sizes = [1, 8, 4], strides = [1, 1, 1]} : vector<1x8x32xf32> to vector<1x8x4xf32>
    %85 = vector.extract_strided_slice %23 {offsets = [0, 0, 8], sizes = [1, 8, 4], strides = [1, 1, 1]} : vector<1x8x32xf32> to vector<1x8x4xf32>
    "tpu.trace_start"() <{level = 10 : i32, message = "blc,bmc->blm"}> : () -> ()
    %cst_30 = arith.constant dense<0.000000e+00> : vector<1x8x8xf32>
    %86 = tpu.matmul %83, %84, %cst_30 {dimension_numbers = #tpu.dot_dimension_numbers<[2], [2], [1], [1], [0, 0, 0, 1, 1, 1], [0], [0]>} : vector<1x8x4xf32>, vector<1x8x4xf32>, vector<1x8x8xf32> -> vector<1x8x8xf32>
    "tpu.trace_stop"() : () -> ()
    %87 = arith.addf %86, %28 : vector<1x8x8xf32>
    %cst_31 = arith.constant dense<0xFF800000> : vector<1x8xf32>
    %88 = vector.multi_reduction <maximumf>, %87, %cst_31 [2] : vector<1x8x8xf32> to vector<1x8xf32>
    %89 = vector.shape_cast %88 : vector<1x8xf32> to vector<1x8x1xf32>
    %90 = vector.broadcast %89 : vector<1x8x1xf32> to vector<1x8x8xf32>
    %91 = arith.subf %87, %90 : vector<1x8x8xf32>
    %92 = math.exp %91 : vector<1x8x8xf32>
    %93 = arith.mulf %92, %24 : vector<1x8x8xf32>
    %cst_32 = arith.constant dense<0.000000e+00> : vector<1x8xf32>
    %94 = vector.multi_reduction <add>, %93, %cst_32 [2] : vector<1x8x8xf32> to vector<1x8xf32>
    %95 = vector.shape_cast %94 : vector<1x8xf32> to vector<1x8x1xf32>
    %96 = tpu.reciprocal %95 {approx = true} : vector<1x8x1xf32> -> vector<1x8x1xf32>
    %97 = arith.mulf %95, %96 : vector<1x8x1xf32>
    %cst_33 = arith.constant 2.000000e+00 : f32
    %98 = vector.broadcast %cst_33 : f32 to vector<1x8x1xf32>
    %99 = arith.subf %98, %97 : vector<1x8x1xf32>
    %100 = arith.mulf %96, %99 : vector<1x8x1xf32>
    %cst_34 = arith.constant 0.000000e+00 : f32
    %101 = vector.broadcast %cst_34 : f32 to vector<1x8x1xf32>
    %102 = arith.cmpf ogt, %95, %101 : vector<1x8x1xf32>
    %103 = vector.broadcast %100 : vector<1x8x1xf32> to vector<1x8x8xf32>
    %104 = arith.mulf %93, %103 : vector<1x8x8xf32>
    %cst_35 = arith.constant 0.000000e+00 : f32
    %105 = vector.shape_cast %102 : vector<1x8x1xi1> to vector<1x8x1xi1>
    %106 = vector.broadcast %105 : vector<1x8x1xi1> to vector<1x8x8xi1>
    %107 = vector.broadcast %cst_35 : f32 to vector<1x8x8xf32>
    %108 = arith.select %106, %104, %107 : vector<1x8x8xi1>, vector<1x8x8xf32>
    "tpu.trace_start"() <{level = 10 : i32, message = "blm,bmc->blc"}> : () -> ()
    %cst_36 = arith.constant dense<0.000000e+00> : vector<1x8x4xf32>
    %109 = tpu.matmul %108, %85, %cst_36 {dimension_numbers = #tpu.dot_dimension_numbers<[2], [1], [1], [2], [0, 0, 0, 1, 1, 2], [0], [0]>} : vector<1x8x8xf32>, vector<1x8x4xf32>, vector<1x8x4xf32> -> vector<1x8x4xf32>
    "tpu.trace_stop"() : () -> ()
    %110 = vector.extract_strided_slice %19 {offsets = [0, 0, 12], sizes = [1, 8, 4], strides = [1, 1, 1]} : vector<1x8x32xf32> to vector<1x8x4xf32>
    %111 = vector.extract_strided_slice %21 {offsets = [0, 0, 12], sizes = [1, 8, 4], strides = [1, 1, 1]} : vector<1x8x32xf32> to vector<1x8x4xf32>
    %112 = vector.extract_strided_slice %23 {offsets = [0, 0, 12], sizes = [1, 8, 4], strides = [1, 1, 1]} : vector<1x8x32xf32> to vector<1x8x4xf32>
    "tpu.trace_start"() <{level = 10 : i32, message = "blc,bmc->blm"}> : () -> ()
    %cst_37 = arith.constant dense<0.000000e+00> : vector<1x8x8xf32>
    %113 = tpu.matmul %110, %111, %cst_37 {dimension_numbers = #tpu.dot_dimension_numbers<[2], [2], [1], [1], [0, 0, 0, 1, 1, 1], [0], [0]>} : vector<1x8x4xf32>, vector<1x8x4xf32>, vector<1x8x8xf32> -> vector<1x8x8xf32>
    "tpu.trace_stop"() : () -> ()
    %114 = arith.addf %113, %28 : vector<1x8x8xf32>
    %cst_38 = arith.constant dense<0xFF800000> : vector<1x8xf32>
    %115 = vector.multi_reduction <maximumf>, %114, %cst_38 [2] : vector<1x8x8xf32> to vector<1x8xf32>
    %116 = vector.shape_cast %115 : vector<1x8xf32> to vector<1x8x1xf32>
    %117 = vector.broadcast %116 : vector<1x8x1xf32> to vector<1x8x8xf32>
    %118 = arith.subf %114, %117 : vector<1x8x8xf32>
    %119 = math.exp %118 : vector<1x8x8xf32>
    %120 = arith.mulf %119, %24 : vector<1x8x8xf32>
    %cst_39 = arith.constant dense<0.000000e+00> : vector<1x8xf32>
    %121 = vector.multi_reduction <add>, %120, %cst_39 [2] : vector<1x8x8xf32> to vector<1x8xf32>
    %122 = vector.shape_cast %121 : vector<1x8xf32> to vector<1x8x1xf32>
    %123 = tpu.reciprocal %122 {approx = true} : vector<1x8x1xf32> -> vector<1x8x1xf32>
    %124 = arith.mulf %122, %123 : vector<1x8x1xf32>
    %cst_40 = arith.constant 2.000000e+00 : f32
    %125 = vector.broadcast %cst_40 : f32 to vector<1x8x1xf32>
    %126 = arith.subf %125, %124 : vector<1x8x1xf32>
    %127 = arith.mulf %123, %126 : vector<1x8x1xf32>
    %cst_41 = arith.constant 0.000000e+00 : f32
    %128 = vector.broadcast %cst_41 : f32 to vector<1x8x1xf32>
    %129 = arith.cmpf ogt, %122, %128 : vector<1x8x1xf32>
    %130 = vector.broadcast %127 : vector<1x8x1xf32> to vector<1x8x8xf32>
    %131 = arith.mulf %120, %130 : vector<1x8x8xf32>
    %cst_42 = arith.constant 0.000000e+00 : f32
    %132 = vector.shape_cast %129 : vector<1x8x1xi1> to vector<1x8x1xi1>
    %133 = vector.broadcast %132 : vector<1x8x1xi1> to vector<1x8x8xi1>
    %134 = vector.broadcast %cst_42 : f32 to vector<1x8x8xf32>
    %135 = arith.select %133, %131, %134 : vector<1x8x8xi1>, vector<1x8x8xf32>
    "tpu.trace_start"() <{level = 10 : i32, message = "blm,bmc->blc"}> : () -> ()
    %cst_43 = arith.constant dense<0.000000e+00> : vector<1x8x4xf32>
    %136 = tpu.matmul %135, %112, %cst_43 {dimension_numbers = #tpu.dot_dimension_numbers<[2], [1], [1], [2], [0, 0, 0, 1, 1, 2], [0], [0]>} : vector<1x8x8xf32>, vector<1x8x4xf32>, vector<1x8x4xf32> -> vector<1x8x4xf32>
    "tpu.trace_stop"() : () -> ()
    %137 = vector.extract_strided_slice %19 {offsets = [0, 0, 16], sizes = [1, 8, 4], strides = [1, 1, 1]} : vector<1x8x32xf32> to vector<1x8x4xf32>
    %138 = vector.extract_strided_slice %21 {offsets = [0, 0, 16], sizes = [1, 8, 4], strides = [1, 1, 1]} : vector<1x8x32xf32> to vector<1x8x4xf32>
    %139 = vector.extract_strided_slice %23 {offsets = [0, 0, 16], sizes = [1, 8, 4], strides = [1, 1, 1]} : vector<1x8x32xf32> to vector<1x8x4xf32>
    "tpu.trace_start"() <{level = 10 : i32, message = "blc,bmc->blm"}> : () -> ()
    %cst_44 = arith.constant dense<0.000000e+00> : vector<1x8x8xf32>
    %140 = tpu.matmul %137, %138, %cst_44 {dimension_numbers = #tpu.dot_dimension_numbers<[2], [2], [1], [1], [0, 0, 0, 1, 1, 1], [0], [0]>} : vector<1x8x4xf32>, vector<1x8x4xf32>, vector<1x8x8xf32> -> vector<1x8x8xf32>
    "tpu.trace_stop"() : () -> ()
    %141 = arith.addf %140, %28 : vector<1x8x8xf32>
    %cst_45 = arith.constant dense<0xFF800000> : vector<1x8xf32>
    %142 = vector.multi_reduction <maximumf>, %141, %cst_45 [2] : vector<1x8x8xf32> to vector<1x8xf32>
    %143 = vector.shape_cast %142 : vector<1x8xf32> to vector<1x8x1xf32>
    %144 = vector.broadcast %143 : vector<1x8x1xf32> to vector<1x8x8xf32>
    %145 = arith.subf %141, %144 : vector<1x8x8xf32>
    %146 = math.exp %145 : vector<1x8x8xf32>
    %147 = arith.mulf %146, %24 : vector<1x8x8xf32>
    %cst_46 = arith.constant dense<0.000000e+00> : vector<1x8xf32>
    %148 = vector.multi_reduction <add>, %147, %cst_46 [2] : vector<1x8x8xf32> to vector<1x8xf32>
    %149 = vector.shape_cast %148 : vector<1x8xf32> to vector<1x8x1xf32>
    %150 = tpu.reciprocal %149 {approx = true} : vector<1x8x1xf32> -> vector<1x8x1xf32>
    %151 = arith.mulf %149, %150 : vector<1x8x1xf32>
    %cst_47 = arith.constant 2.000000e+00 : f32
    %152 = vector.broadcast %cst_47 : f32 to vector<1x8x1xf32>
    %153 = arith.subf %152, %151 : vector<1x8x1xf32>
    %154 = arith.mulf %150, %153 : vector<1x8x1xf32>
    %cst_48 = arith.constant 0.000000e+00 : f32
    %155 = vector.broadcast %cst_48 : f32 to vector<1x8x1xf32>
    %156 = arith.cmpf ogt, %149, %155 : vector<1x8x1xf32>
    %157 = vector.broadcast %154 : vector<1x8x1xf32> to vector<1x8x8xf32>
    %158 = arith.mulf %147, %157 : vector<1x8x8xf32>
    %cst_49 = arith.constant 0.000000e+00 : f32
    %159 = vector.shape_cast %156 : vector<1x8x1xi1> to vector<1x8x1xi1>
    %160 = vector.broadcast %159 : vector<1x8x1xi1> to vector<1x8x8xi1>
    %161 = vector.broadcast %cst_49 : f32 to vector<1x8x8xf32>
    %162 = arith.select %160, %158, %161 : vector<1x8x8xi1>, vector<1x8x8xf32>
    "tpu.trace_start"() <{level = 10 : i32, message = "blm,bmc->blc"}> : () -> ()
    %cst_50 = arith.constant dense<0.000000e+00> : vector<1x8x4xf32>
    %163 = tpu.matmul %162, %139, %cst_50 {dimension_numbers = #tpu.dot_dimension_numbers<[2], [1], [1], [2], [0, 0, 0, 1, 1, 2], [0], [0]>} : vector<1x8x8xf32>, vector<1x8x4xf32>, vector<1x8x4xf32> -> vector<1x8x4xf32>
    "tpu.trace_stop"() : () -> ()
    %164 = vector.extract_strided_slice %19 {offsets = [0, 0, 20], sizes = [1, 8, 4], strides = [1, 1, 1]} : vector<1x8x32xf32> to vector<1x8x4xf32>
    %165 = vector.extract_strided_slice %21 {offsets = [0, 0, 20], sizes = [1, 8, 4], strides = [1, 1, 1]} : vector<1x8x32xf32> to vector<1x8x4xf32>
    %166 = vector.extract_strided_slice %23 {offsets = [0, 0, 20], sizes = [1, 8, 4], strides = [1, 1, 1]} : vector<1x8x32xf32> to vector<1x8x4xf32>
    "tpu.trace_start"() <{level = 10 : i32, message = "blc,bmc->blm"}> : () -> ()
    %cst_51 = arith.constant dense<0.000000e+00> : vector<1x8x8xf32>
    %167 = tpu.matmul %164, %165, %cst_51 {dimension_numbers = #tpu.dot_dimension_numbers<[2], [2], [1], [1], [0, 0, 0, 1, 1, 1], [0], [0]>} : vector<1x8x4xf32>, vector<1x8x4xf32>, vector<1x8x8xf32> -> vector<1x8x8xf32>
    "tpu.trace_stop"() : () -> ()
    %168 = arith.addf %167, %28 : vector<1x8x8xf32>
    %cst_52 = arith.constant dense<0xFF800000> : vector<1x8xf32>
    %169 = vector.multi_reduction <maximumf>, %168, %cst_52 [2] : vector<1x8x8xf32> to vector<1x8xf32>
    %170 = vector.shape_cast %169 : vector<1x8xf32> to vector<1x8x1xf32>
    %171 = vector.broadcast %170 : vector<1x8x1xf32> to vector<1x8x8xf32>
    %172 = arith.subf %168, %171 : vector<1x8x8xf32>
    %173 = math.exp %172 : vector<1x8x8xf32>
    %174 = arith.mulf %173, %24 : vector<1x8x8xf32>
    %cst_53 = arith.constant dense<0.000000e+00> : vector<1x8xf32>
    %175 = vector.multi_reduction <add>, %174, %cst_53 [2] : vector<1x8x8xf32> to vector<1x8xf32>
    %176 = vector.shape_cast %175 : vector<1x8xf32> to vector<1x8x1xf32>
    %177 = tpu.reciprocal %176 {approx = true} : vector<1x8x1xf32> -> vector<1x8x1xf32>
    %178 = arith.mulf %176, %177 : vector<1x8x1xf32>
    %cst_54 = arith.constant 2.000000e+00 : f32
    %179 = vector.broadcast %cst_54 : f32 to vector<1x8x1xf32>
    %180 = arith.subf %179, %178 : vector<1x8x1xf32>
    %181 = arith.mulf %177, %180 : vector<1x8x1xf32>
    %cst_55 = arith.constant 0.000000e+00 : f32
    %182 = vector.broadcast %cst_55 : f32 to vector<1x8x1xf32>
    %183 = arith.cmpf ogt, %176, %182 : vector<1x8x1xf32>
    %184 = vector.broadcast %181 : vector<1x8x1xf32> to vector<1x8x8xf32>
    %185 = arith.mulf %174, %184 : vector<1x8x8xf32>
    %cst_56 = arith.constant 0.000000e+00 : f32
    %186 = vector.shape_cast %183 : vector<1x8x1xi1> to vector<1x8x1xi1>
    %187 = vector.broadcast %186 : vector<1x8x1xi1> to vector<1x8x8xi1>
    %188 = vector.broadcast %cst_56 : f32 to vector<1x8x8xf32>
    %189 = arith.select %187, %185, %188 : vector<1x8x8xi1>, vector<1x8x8xf32>
    "tpu.trace_start"() <{level = 10 : i32, message = "blm,bmc->blc"}> : () -> ()
    %cst_57 = arith.constant dense<0.000000e+00> : vector<1x8x4xf32>
    %190 = tpu.matmul %189, %166, %cst_57 {dimension_numbers = #tpu.dot_dimension_numbers<[2], [1], [1], [2], [0, 0, 0, 1, 1, 2], [0], [0]>} : vector<1x8x8xf32>, vector<1x8x4xf32>, vector<1x8x4xf32> -> vector<1x8x4xf32>
    "tpu.trace_stop"() : () -> ()
    %191 = vector.extract_strided_slice %19 {offsets = [0, 0, 24], sizes = [1, 8, 4], strides = [1, 1, 1]} : vector<1x8x32xf32> to vector<1x8x4xf32>
    %192 = vector.extract_strided_slice %21 {offsets = [0, 0, 24], sizes = [1, 8, 4], strides = [1, 1, 1]} : vector<1x8x32xf32> to vector<1x8x4xf32>
    %193 = vector.extract_strided_slice %23 {offsets = [0, 0, 24], sizes = [1, 8, 4], strides = [1, 1, 1]} : vector<1x8x32xf32> to vector<1x8x4xf32>
    "tpu.trace_start"() <{level = 10 : i32, message = "blc,bmc->blm"}> : () -> ()
    %cst_58 = arith.constant dense<0.000000e+00> : vector<1x8x8xf32>
    %194 = tpu.matmul %191, %192, %cst_58 {dimension_numbers = #tpu.dot_dimension_numbers<[2], [2], [1], [1], [0, 0, 0, 1, 1, 1], [0], [0]>} : vector<1x8x4xf32>, vector<1x8x4xf32>, vector<1x8x8xf32> -> vector<1x8x8xf32>
    "tpu.trace_stop"() : () -> ()
    %195 = arith.addf %194, %28 : vector<1x8x8xf32>
    %cst_59 = arith.constant dense<0xFF800000> : vector<1x8xf32>
    %196 = vector.multi_reduction <maximumf>, %195, %cst_59 [2] : vector<1x8x8xf32> to vector<1x8xf32>
    %197 = vector.shape_cast %196 : vector<1x8xf32> to vector<1x8x1xf32>
    %198 = vector.broadcast %197 : vector<1x8x1xf32> to vector<1x8x8xf32>
    %199 = arith.subf %195, %198 : vector<1x8x8xf32>
    %200 = math.exp %199 : vector<1x8x8xf32>
    %201 = arith.mulf %200, %24 : vector<1x8x8xf32>
    %cst_60 = arith.constant dense<0.000000e+00> : vector<1x8xf32>
    %202 = vector.multi_reduction <add>, %201, %cst_60 [2] : vector<1x8x8xf32> to vector<1x8xf32>
    %203 = vector.shape_cast %202 : vector<1x8xf32> to vector<1x8x1xf32>
    %204 = tpu.reciprocal %203 {approx = true} : vector<1x8x1xf32> -> vector<1x8x1xf32>
    %205 = arith.mulf %203, %204 : vector<1x8x1xf32>
    %cst_61 = arith.constant 2.000000e+00 : f32
    %206 = vector.broadcast %cst_61 : f32 to vector<1x8x1xf32>
    %207 = arith.subf %206, %205 : vector<1x8x1xf32>
    %208 = arith.mulf %204, %207 : vector<1x8x1xf32>
    %cst_62 = arith.constant 0.000000e+00 : f32
    %209 = vector.broadcast %cst_62 : f32 to vector<1x8x1xf32>
    %210 = arith.cmpf ogt, %203, %209 : vector<1x8x1xf32>
    %211 = vector.broadcast %208 : vector<1x8x1xf32> to vector<1x8x8xf32>
    %212 = arith.mulf %201, %211 : vector<1x8x8xf32>
    %cst_63 = arith.constant 0.000000e+00 : f32
    %213 = vector.shape_cast %210 : vector<1x8x1xi1> to vector<1x8x1xi1>
    %214 = vector.broadcast %213 : vector<1x8x1xi1> to vector<1x8x8xi1>
    %215 = vector.broadcast %cst_63 : f32 to vector<1x8x8xf32>
    %216 = arith.select %214, %212, %215 : vector<1x8x8xi1>, vector<1x8x8xf32>
    "tpu.trace_start"() <{level = 10 : i32, message = "blm,bmc->blc"}> : () -> ()
    %cst_64 = arith.constant dense<0.000000e+00> : vector<1x8x4xf32>
    %217 = tpu.matmul %216, %193, %cst_64 {dimension_numbers = #tpu.dot_dimension_numbers<[2], [1], [1], [2], [0, 0, 0, 1, 1, 2], [0], [0]>} : vector<1x8x8xf32>, vector<1x8x4xf32>, vector<1x8x4xf32> -> vector<1x8x4xf32>
    "tpu.trace_stop"() : () -> ()
    %218 = vector.extract_strided_slice %19 {offsets = [0, 0, 28], sizes = [1, 8, 4], strides = [1, 1, 1]} : vector<1x8x32xf32> to vector<1x8x4xf32>
    %219 = vector.extract_strided_slice %21 {offsets = [0, 0, 28], sizes = [1, 8, 4], strides = [1, 1, 1]} : vector<1x8x32xf32> to vector<1x8x4xf32>
    %220 = vector.extract_strided_slice %23 {offsets = [0, 0, 28], sizes = [1, 8, 4], strides = [1, 1, 1]} : vector<1x8x32xf32> to vector<1x8x4xf32>
    "tpu.trace_start"() <{level = 10 : i32, message = "blc,bmc->blm"}> : () -> ()
    %cst_65 = arith.constant dense<0.000000e+00> : vector<1x8x8xf32>
    %221 = tpu.matmul %218, %219, %cst_65 {dimension_numbers = #tpu.dot_dimension_numbers<[2], [2], [1], [1], [0, 0, 0, 1, 1, 1], [0], [0]>} : vector<1x8x4xf32>, vector<1x8x4xf32>, vector<1x8x8xf32> -> vector<1x8x8xf32>
    "tpu.trace_stop"() : () -> ()
    %222 = arith.addf %221, %28 : vector<1x8x8xf32>
    %cst_66 = arith.constant dense<0xFF800000> : vector<1x8xf32>
    %223 = vector.multi_reduction <maximumf>, %222, %cst_66 [2] : vector<1x8x8xf32> to vector<1x8xf32>
    %224 = vector.shape_cast %223 : vector<1x8xf32> to vector<1x8x1xf32>
    %225 = vector.broadcast %224 : vector<1x8x1xf32> to vector<1x8x8xf32>
    %226 = arith.subf %222, %225 : vector<1x8x8xf32>
    %227 = math.exp %226 : vector<1x8x8xf32>
    %228 = arith.mulf %227, %24 : vector<1x8x8xf32>
    %cst_67 = arith.constant dense<0.000000e+00> : vector<1x8xf32>
    %229 = vector.multi_reduction <add>, %228, %cst_67 [2] : vector<1x8x8xf32> to vector<1x8xf32>
    %230 = vector.shape_cast %229 : vector<1x8xf32> to vector<1x8x1xf32>
    %231 = tpu.reciprocal %230 {approx = true} : vector<1x8x1xf32> -> vector<1x8x1xf32>
    %232 = arith.mulf %230, %231 : vector<1x8x1xf32>
    %cst_68 = arith.constant 2.000000e+00 : f32
    %233 = vector.broadcast %cst_68 : f32 to vector<1x8x1xf32>
    %234 = arith.subf %233, %232 : vector<1x8x1xf32>
    %235 = arith.mulf %231, %234 : vector<1x8x1xf32>
    %cst_69 = arith.constant 0.000000e+00 : f32
    %236 = vector.broadcast %cst_69 : f32 to vector<1x8x1xf32>
    %237 = arith.cmpf ogt, %230, %236 : vector<1x8x1xf32>
    %238 = vector.broadcast %235 : vector<1x8x1xf32> to vector<1x8x8xf32>
    %239 = arith.mulf %228, %238 : vector<1x8x8xf32>
    %cst_70 = arith.constant 0.000000e+00 : f32
    %240 = vector.shape_cast %237 : vector<1x8x1xi1> to vector<1x8x1xi1>
    %241 = vector.broadcast %240 : vector<1x8x1xi1> to vector<1x8x8xi1>
    %242 = vector.broadcast %cst_70 : f32 to vector<1x8x8xf32>
    %243 = arith.select %241, %239, %242 : vector<1x8x8xi1>, vector<1x8x8xf32>
    "tpu.trace_start"() <{level = 10 : i32, message = "blm,bmc->blc"}> : () -> ()
    %cst_71 = arith.constant dense<0.000000e+00> : vector<1x8x4xf32>
    %244 = tpu.matmul %243, %220, %cst_71 {dimension_numbers = #tpu.dot_dimension_numbers<[2], [1], [1], [2], [0, 0, 0, 1, 1, 2], [0], [0]>} : vector<1x8x8xf32>, vector<1x8x4xf32>, vector<1x8x4xf32> -> vector<1x8x4xf32>
    "tpu.trace_stop"() : () -> ()
    %245 = tpu.concatenate %55, %82, %109, %136, %163, %190, %217, %244 in 2 : vector<1x8x4xf32>, vector<1x8x4xf32>, vector<1x8x4xf32>, vector<1x8x4xf32>, vector<1x8x4xf32>, vector<1x8x4xf32>, vector<1x8x4xf32>, vector<1x8x4xf32> -> vector<1x8x32xf32>
    %246 = vector.shape_cast %245 : vector<1x8x32xf32> to vector<8x32xf32>
    %247 = vector.extract_strided_slice %5 {offsets = [0, 96], sizes = [32, 32], strides = [1, 1]} : vector<32x256xf32> to vector<32x32xf32>
    %cst_72 = arith.constant dense<0.000000e+00> : vector<8x32xf32>
    %248 = tpu.matmul %246, %247, %cst_72 {dimension_numbers = #tpu.dot_dimension_numbers<[1], [0], [0], [1], [0, 0, 1, 1], [], []>} : vector<8x32xf32>, vector<32x32xf32>, vector<8x32xf32> -> vector<8x32xf32>
    %249 = arith.addf %3, %248 : vector<8x32xf32>
    %cst_73 = arith.constant dense<0.000000e+00> : vector<8xf32>
    %250 = vector.multi_reduction <add>, %249, %cst_73 [1] : vector<8x32xf32> to vector<8xf32>
    %251 = vector.shape_cast %250 : vector<8xf32> to vector<8x1xf32>
    %cst_74 = arith.constant 3.200000e+01 : f32
    %252 = vector.broadcast %cst_74 : f32 to vector<8x1xf32>
    %253 = arith.divf %251, %252 : vector<8x1xf32>
    %254 = vector.broadcast %253 : vector<8x1xf32> to vector<8x32xf32>
    %255 = arith.subf %249, %254 : vector<8x32xf32>
    %256 = arith.mulf %255, %255 : vector<8x32xf32>
    %cst_75 = arith.constant dense<0.000000e+00> : vector<8xf32>
    %257 = vector.multi_reduction <add>, %256, %cst_75 [1] : vector<8x32xf32> to vector<8xf32>
    %258 = vector.shape_cast %257 : vector<8xf32> to vector<8x1xf32>
    %cst_76 = arith.constant 3.200000e+01 : f32
    %259 = vector.broadcast %cst_76 : f32 to vector<8x1xf32>
    %260 = arith.divf %258, %259 : vector<8x1xf32>
    %261 = vector.broadcast %253 : vector<8x1xf32> to vector<8x32xf32>
    %262 = arith.subf %249, %261 : vector<8x32xf32>
    %cst_77 = arith.constant 9.99999997E-7 : f32
    %263 = vector.broadcast %cst_77 : f32 to vector<8x1xf32>
    %264 = arith.addf %260, %263 : vector<8x1xf32>
    %265 = math.rsqrt %264 : vector<8x1xf32>
    %266 = vector.broadcast %265 : vector<8x1xf32> to vector<8x32xf32>
    %267 = arith.mulf %262, %266 : vector<8x32xf32>
    %268 = vector.broadcast %10 : vector<1x32xf32> to vector<8x32xf32>
    %269 = arith.mulf %267, %268 : vector<8x32xf32>
    %270 = vector.broadcast %11 : vector<1x32xf32> to vector<8x32xf32>
    %271 = arith.addf %269, %270 : vector<8x32xf32>
    %272 = vector.extract_strided_slice %5 {offsets = [0, 128], sizes = [32, 128], strides = [1, 1]} : vector<32x256xf32> to vector<32x128xf32>
    %cst_78 = arith.constant dense<0.000000e+00> : vector<8x128xf32>
    %273 = tpu.matmul %271, %272, %cst_78 {dimension_numbers = #tpu.dot_dimension_numbers<[1], [0], [0], [1], [0, 0, 1, 1], [], []>} : vector<8x32xf32>, vector<32x128xf32>, vector<8x128xf32> -> vector<8x128xf32>
    %274 = vector.broadcast %15 : vector<1x128xf32> to vector<8x128xf32>
    %275 = arith.addf %273, %274 : vector<8x128xf32>
    %cst_79 = arith.constant 0.000000e+00 : f32
    %276 = vector.broadcast %cst_79 : f32 to vector<8x128xf32>
    %277 = arith.cmpf oge, %275, %276 : vector<8x128xf32>
    %cst_80 = arith.constant 2.000000e-01 : f32
    %278 = vector.broadcast %cst_80 : f32 to vector<8x128xf32>
    %279 = arith.mulf %278, %275 : vector<8x128xf32>
    %280 = arith.select %277, %275, %279 : vector<8x128xi1>, vector<8x128xf32>
    %cst_81 = arith.constant dense<0.000000e+00> : vector<8x32xf32>
    %281 = tpu.matmul %280, %7, %cst_81 {dimension_numbers = #tpu.dot_dimension_numbers<[1], [0], [0], [1], [0, 0, 1, 1], [], []>} : vector<8x128xf32>, vector<128x32xf32>, vector<8x32xf32> -> vector<8x32xf32>
    %282 = vector.broadcast %14 : vector<1x32xf32> to vector<8x32xf32>
    %283 = arith.addf %281, %282 : vector<8x32xf32>
    %284 = arith.addf %271, %283 : vector<8x32xf32>
    %cst_82 = arith.constant dense<0.000000e+00> : vector<8xf32>
    %285 = vector.multi_reduction <add>, %284, %cst_82 [1] : vector<8x32xf32> to vector<8xf32>
    %286 = vector.shape_cast %285 : vector<8xf32> to vector<8x1xf32>
    %cst_83 = arith.constant 3.200000e+01 : f32
    %287 = vector.broadcast %cst_83 : f32 to vector<8x1xf32>
    %288 = arith.divf %286, %287 : vector<8x1xf32>
    %289 = vector.broadcast %288 : vector<8x1xf32> to vector<8x32xf32>
    %290 = arith.subf %284, %289 : vector<8x32xf32>
    %291 = arith.mulf %290, %290 : vector<8x32xf32>
    %cst_84 = arith.constant dense<0.000000e+00> : vector<8xf32>
    %292 = vector.multi_reduction <add>, %291, %cst_84 [1] : vector<8x32xf32> to vector<8xf32>
    %293 = vector.shape_cast %292 : vector<8xf32> to vector<8x1xf32>
    %cst_85 = arith.constant 3.200000e+01 : f32
    %294 = vector.broadcast %cst_85 : f32 to vector<8x1xf32>
    %295 = arith.divf %293, %294 : vector<8x1xf32>
    %296 = vector.broadcast %288 : vector<8x1xf32> to vector<8x32xf32>
    %297 = arith.subf %284, %296 : vector<8x32xf32>
    %cst_86 = arith.constant 9.99999997E-7 : f32
    %298 = vector.broadcast %cst_86 : f32 to vector<8x1xf32>
    %299 = arith.addf %295, %298 : vector<8x1xf32>
    %300 = math.rsqrt %299 : vector<8x1xf32>
    %301 = vector.broadcast %300 : vector<8x1xf32> to vector<8x32xf32>
    %302 = arith.mulf %297, %301 : vector<8x32xf32>
    %303 = vector.broadcast %12 : vector<1x32xf32> to vector<8x32xf32>
    %304 = arith.mulf %302, %303 : vector<8x32xf32>
    %305 = vector.broadcast %13 : vector<1x32xf32> to vector<8x32xf32>
    %306 = arith.addf %304, %305 : vector<8x32xf32>
    %c0_87 = arith.constant 0 : index
    %c0_88 = arith.constant 0 : index
    %307 = vector.load %arg7[%c0_87, %c0_88] : memref<8x32xf32, #tpu.memory_space<vmem>>, vector<8x32xf32>
    tpu.vector_store %arg7[%c0_87, %c0_88], %306 {strides = array<i32>} : memref<8x32xf32, #tpu.memory_space<vmem>>, vector<8x32xf32>,
    return
  }
  func.func @transform_0(%arg0: i32, %arg1: i32) -> (i32, i32) {
    %c0_i32 = arith.constant 0 : i32
    %c0_i32_0 = arith.constant 0 : i32
    return %arg0, %c0_i32 : i32, i32
  }
  func.func @transform_1(%arg0: i32, %arg1: i32) -> (i32, i32, i32) {
    %c0_i32 = arith.constant 0 : i32
    %c0_i32_0 = arith.constant 0 : i32
    %c0_i32_1 = arith.constant 0 : i32
    return %arg0, %c0_i32, %c0_i32_0 : i32, i32, i32
  }
  func.func @transform_2(%arg0: i32, %arg1: i32) -> (i32, i32, i32) {
    %c0_i32 = arith.constant 0 : i32
    %c0_i32_0 = arith.constant 0 : i32
    %c0_i32_1 = arith.constant 0 : i32
    return %arg1, %c0_i32, %c0_i32_0 : i32, i32, i32
  }
  func.func @transform_3(%arg0: i32, %arg1: i32) -> (i32, i32, i32) {
    %c0_i32 = arith.constant 0 : i32
    %c0_i32_0 = arith.constant 0 : i32
    %c0_i32_1 = arith.constant 0 : i32
    return %arg1, %c0_i32, %c0_i32_0 : i32, i32, i32
  }
  func.func @transform_4(%arg0: i32, %arg1: i32) -> (i32, i32, i32) {
    %c0_i32 = arith.constant 0 : i32
    %c0_i32_0 = arith.constant 0 : i32
    %c0_i32_1 = arith.constant 0 : i32
    return %arg1, %c0_i32, %c0_i32_0 : i32, i32, i32
  }
  func.func @transform_5(%arg0: i32, %arg1: i32) -> (i32, i32) {
    %c0_i32 = arith.constant 0 : i32
    %c0_i32_0 = arith.constant 0 : i32
    return %arg0, %c0_i32 : i32, i32
  }
}

</mosaic_0001>

<bundles_post_ra>
// kernel: tpu_custom_call.1
= control target key start
LH: loop header
LB: loop body
LE: loop exit
PB: predicated region body
PF: predicated region fallthrough
CT: control target
= control target key end

     0   :  { %s3295_s0 = inlined_call_operand.vmem [shape: f32[16,32], index: 0, kind: input, shape index: {}]   ;;  %s3296_s1 = inlined_call_operand.vmem [shape: f32[2,8,8], index: 1, kind: input, shape index: {}]   ;;  %s3297_s2 = inlined_call_operand.vmem [shape: f32[2,32,256], index: 2, kind: input, shape index: {}]   ;;  %s3298_s3 = inlined_call_operand.vmem [shape: f32[2,128,32], index: 3, kind: input, shape index: {}]   ;;  %s3299_s4 = inlined_call_operand.vmem [shape: f32[2,8,128], index: 4, kind: input, shape index: {}]   ;;  %s3300_s5 = inlined_call_operand.hbm [shape: f32[16,32], index: 5, kind: output, shape index: {}]  }
   0x1   :  { %3306 = sst [smem:[#allocation11_spill]] %s3295_s0 }
   0x2   :  { %10 = vsyncpa [#allocation3], 0 }
   0x3   :  { %12 = vsyncpa [#allocation3 + $0x1], 0  ;;  %s2880_s18 = smov 0   ;;  %s2882_s19 = smov 0  }
   0x4   :  { %s2884_s20 = smov 0   ;;  %s2886_s21 = smov 0  }
   0x5   :  { %s2888_s22 = smov 0   ;;  %s2890_s23 = smov 0  }
   0x6   :  { %s2892_s24 = smov 0   ;;  %s2894_s25 = smov 0  }
   0x7 LB: > { %3307 = sst [smem:[#allocation5_spill]] %s2793_s20  ;;  %s2266_s26 = sadd.s32 4294967295, %s2813_s25   ;;  %s2813_s25 = sphi %s2894_s25, %s18_s25   ;;  %s2809_s24 = sphi %s2892_s24, %s3322_s24   ;;  %s2805_s23 = sphi %s2890_s23, %s3321_s23   ;;  %s2801_s22 = sphi %s2888_s22, %s3320_s22   ;;  %s2797_s21 = sphi %s2886_s21, %s3319_s21   ;;  %s2793_s20 = sphi %s2884_s20, %s3318_s20   ;;  %s2789_s19 = sphi %s2882_s19, %s3324_s19   ;;  %s2785_s18 = sphi %s2880_s18, %s3323_s18  }
   0x8   : > { %3308 = sst [smem:[#allocation6_spill]] %s2805_s23  ;;  %s2267_s27 = sadd.s32 4294967294, %s2813_s25  }
   0x9   : > { %3309 = sst [smem:[#allocation7_spill]] %s2809_s24  ;;  %s27_s28 = sadd.s32 1, %s2805_s23 }
   0xa   : > { %p28_p0 = scmp.ge.s32.totalorder %s27_s28, 2  ;;  %s30_s29 = sadd.s32 1, %s2809_s24 }
   0xb   : > { %p177_p1 = scmp.ne.s32.totalorder %s2793_s20, %s2789_s19  ;;  %p178_p2 = scmp.eq.s32.totalorder %s2266_s26, 3 }
   0xc   : > { %s3326_s28 = smov (%p28_p0, %s27_s28), 0  ;;  %s3328_s29 = smov (!%p28_p0, %s30_s29), %s2809_s24 }
   0xd   : > { %3310 = sst [smem:[#allocation8_spill]] %s3326_s28  ;;  %p2929_p3 = por %p178_p2, %p177_p1 }
   0xe   : > { %p183_p4 = scmp.ne.s32.totalorder %s2789_s19, %s2785_s18  ;;  %p32_p5 = scmp.ge.s32.totalorder %s3328_s29, 2 }
   0xf   : > { %p184_p6 = scmp.eq.s32.totalorder %s2267_s27, 3  ;;  %p2270_p7 = scmp.ge.s32.totalorder %s2813_s25, 1 }
  0x10   : > { %p239_p8 = scmp.lt.s32.totalorder %s2813_s25, 5  ;;  %s3330_s29 = smov (%p32_p5, %s3328_s29), 0 }
  0x11   : > { %3312 = sst [smem:[#allocation9_spill]] %s3330_s29  ;;  %p2939_p9 = por %p184_p6, %p183_p4 }
  0x12   : > { %p240_p10 = pnand %p2270_p7, %p239_p8  ;;  %s164_s7 = ssub.s32 %s2809_s24, %s3330_s29 }
  0x13   : > { %s167_s8 = sadd.s32 1, %s2793_s20  ;;  %p165_p11 = scmp.eq.s32.totalorder %s164_s7, 0 }
  0x14   : > { %243 = sbr.rel (%p240_p10) target bundleno = 2601 (0xa29), region = 40  ;;  %s3304_s10 = sand.u32 (!%p240_p10), 1, %s2789_s19  }
  0x15   : > { %s2947_s9 = scalar_select %p165_p11, %s2793_s20, %s167_s8  }
  0x16   : > { %p284_p12 = scmp.lt.s32.totalorder (!%p240_p10), %s2801_s22, 1  ;;  %s2271_s11 = sshll.u32 (!%p240_p10), %s3304_s10, 3 }
  0x17   : > { %3314 = sst [smem:[#allocation10_spill]] %s2947_s9  ;;  %p292_p13 = scmp.lt.s32.totalorder (!%p240_p10), %s2797_s21, 1 }
  0x18   : > { %s3315_s0 = sld [smem:[#allocation11_spill]] (!%p240_p10)  ;;  %p2279_p0 = scmp.ne.s32.totalorder (!%p240_p10), %s2797_s21, 0 }
  0x1b   : > { %s285_s12 = scalar_select %p284_p12, %s2801_s22, 1 }
  0x1c   : > { %s293_s13 = scalar_select %p292_p13, %s2797_s21, 1 }
  0x1d   : > { %s2272_s14 = sshll.u32 %s285_s12, 3  ;;  %309 = sbr.rel (%p2279_p0) target bundleno = 36 (0x24), region = 44  ;;  %vm311_vm0 = vcmask (!%p2279_p0), 261120  }
  0x1e   : > { %s287_s17 = scalar_lea.vmem %s3315_s0, %s2272_s14  ;;  %s2962_s7 = scalar_lea.vmem %s3296_s1, %s2272_s14 }
  0x1f   : > { %s2312_s8 = sshll.u32 %s293_s13, 6  ;;  %s2313_s29 = sshll.u32 %s293_s13, 7  ;;  %v310_v0 = vld [vmem:[%s287_s17] sm:$0xff] (!%p2279_p0) }
  0x20   : > { %s2967_s23 = scalar_lea.vmem %s3297_s2, %s2312_s8  ;;  %s2972_s12 = scalar_lea.vmem %s3298_s3, %s2313_s29 }
  0x21   : > { %s2278_s20 = sshll.u32 %s293_s13, 3  ;;  %s2979_s14 = scalar_lea.vmem [#allocation2], %s2271_s11 }
  0x22   : > { %s2977_s0 = scalar_lea.vmem %s3299_s4, %s2278_s20  ;;  %312 = vst.msk [vmem:[%s2979_s14] sm:$0xff] (!%p2279_p0), %vm311_vm0, %v310_v0 }
  0x24 PF: > { %v2984_v1 = vld [vmem:[%s2967_s23] sm:$0xff]  ;;  %v2987_v2 = vld [vmem:[%s2967_s23 + $0x10] sm:$0xff]  ;;  %v2815_v4 = vmov 0.0|0.0   ;;  %vm2816_vm1 = vmmov 0   ;;  %v2817_v8 = vmov 0.0   ;;  %vm339_vm2 = vcmask 261120  }
  0x25   : > { %v2990_v3 = vld [vmem:[%s2967_s23 + $0x20] sm:$0xff]  ;;  %2526 = vmatprep.subr.bf16.mxu1 %v2815_v4  ;;  %v2673_v5 = vpack.i.bf16 %v2987_v2, %v2984_v1  ;;  %v2527_v6 = vpack.c.bf16 %v2987_v2, %v2984_v1  ;;  %v2998_v7 = vld [vmem:[%s2967_s23 + $0x30] sm:$0xff]  ;;  %2386 = vmatprep.mubr.msk.f32.mxu1 %vm2816_vm1, %v2817_v8  ;;  %s2818_s20 = smov 124   ;;  %s2819_s21 = smov 96   ;;  %vm419_vm3 = vcmask 31744   ;;  %vm494_vm4 = vcmask 64512  }
  0x26   : > { %2399 = vmatprep.subr.mxu0 %v2817_v8  ;;  %2401 = vmatprep.mubr.msk.f32.mxu0 %vm2816_vm1, %v2817_v8  ;;  %v2530_v9 = vpack.c.bf16 %v2998_v7, %v2990_v3  ;;  %s2820_s24 = smov 88   ;;  %s2821_s28 = smov 92   ;;  %v3075_v28 = vld [vmem:[%s2962_s7] sm:$0xff]  ;;  %vm1831_vm13 = vcmask 97280   ;;  %vm1833_vm14 = vcmask 130048   ;;  %vm1835_vm15 = vcmask 162816  }
  0x27   : > { %2528 = vmatpush3.bf16.msra.mxu1 %v2527_v6  ;;  %s2822_s29 = smov 84   ;;  %s2823_s9 = smov 120   ;;  %v2281_v29 = vadd.f32 -1.0, %v3075_v28  ;;  %vm1837_vm0 = vcmask 195584  }
  0x28   : > { %2529 = vmatprep.subr.bf16.mxu1 %v2815_v4  ;;  %s2824_s10 = smov 80   ;;  %s2825_s11 = smov 116  }
  0x29   : > { %v3009_v10 = vld [vmem:[%s2979_s14] sm:$0xff]  ;;  %s2826_s13 = smov 76   ;;  %s2827_s17 = smov 112   ;;  %v415_v30 = vmul.f32 1e+30, %v2281_v29 }
  0x2a   : > { %s2828_s26 = smov 72   ;;  %s2829_s27 = smov 108  }
  0x2b   : > { %2531 = vmatpush3.bf16.msra.mxu1 %v2530_v9  ;;  %s2830_s8 = smov 68   ;;  %s2831_s15 = smov 104  }
  0x2c   : > { %2389 = vmatprep.subr.mxu1 %v2817_v8  ;;  %s2832_s16 = smov 100   ;;  %s2833_s7 = smov 60  }
  0x2e   : > { %2387 = vmatmul.mubr.msk.f32.vlgmr.msra.gmra.mrb[0].mxu1 %vm339_vm2, %v3009_v10 }
  0x2f   : > { %2391 = vmatprep.mubr.msk.f32.mxu1 %vm2816_vm1, %v2817_v8 }
 0x101   : > { %v3016_v11 = vpop.f32.mrb[0].mxu1 }
 0x102   : > { %590 = vrot.lane.b32.xlu1 %v3016_v11, %s2818_s20  ;;  %417 = vrot.lane.b32.xlu0 %v3016_v11, %s2819_s21  ;;  %v2388_v12 = vpop.f32.mrb[1].mxu1  ;;  %s2834_s20 = smov 64   ;;  %s2835_s21 = smov 56  }
 0x106   : > { %765 = vrot.lane.b32.xlu1 %v3016_v11, %s2820_s24  ;;  %592 = vrot.lane.b32.xlu0 %v3016_v11, %s2821_s28  ;;  %s2836_s24 = smov 48   ;;  %s2837_s28 = smov 52  }
 0x10a   : > { %938 = vrot.lane.b32.xlu1 %v3016_v11, %s2822_s29  ;;  %763 = vrot.lane.b32.xlu0 %v3016_v11, %s2823_s9  ;;  %s2838_s29 = smov 40   ;;  %s2839_s9 = smov 44  }
 0x10e   : > { %1111 = vrot.lane.b32.xlu1 %v3016_v11, %s2824_s10  ;;  %936 = vrot.lane.b32.xlu0 %v3016_v11, %s2825_s11  ;;  %s2840_s10 = smov 36   ;;  %s2841_s11 = smov 32  }
 0x112   : > { %1284 = vrot.lane.b32.xlu1 %v3016_v11, %s2826_s13  ;;  %1109 = vrot.lane.b32.xlu0 %v3016_v11, %s2827_s17  ;;  %s2842_s13 = smov 4   ;;  %s2843_s17 = smov 8  }
 0x116   : > { %1457 = vrot.lane.b32.xlu1 %v3016_v11, %s2828_s26  ;;  %1282 = vrot.lane.b32.xlu0 %v3016_v11, %s2829_s27  ;;  %s2844_s26 = smov 12   ;;  %s2845_s27 = smov 16  }
 0x11a   : > { %1630 = vrot.lane.b32.xlu1 %v3016_v11, %s2830_s8  ;;  %1455 = vrot.lane.b32.xlu0 %v3016_v11, %s2831_s15  ;;  %s2846_s8 = smov 20   ;;  %s2847_s15 = smov 24  }
 0x11e   : > { %1628 = vrot.lane.b32.xlu0 %v3016_v11, %s2832_s16  ;;  %s2848_s16 = smov 28  }
 0x174   : > { %v591_v13 = vpop.permute.xlu1 %590  ;;  %v418_v14 = vpop.permute.xlu0 %417 }
 0x175   : > { %2390 = vmatpush3.xpose.msk.msra.mxu1 %vm419_vm3, %v418_v14 }
 0x176   : > { %2394 = vmatprep.subr.mxu1 %v2817_v8 }
 0x178   : > { %v766_v15 = vpop.permute.xlu1 %765  ;;  %2392 = vmatmul.mubr.msk.f32.vlgmr.msra.gmra.mrb[2].mxu1 %vm419_vm3, %v3016_v11  ;;  %v593_v16 = vpop.permute.xlu0 %592 }
 0x179   : > { %2400 = vmatpush3.xpose.msk.msra.mxu0 %vm419_vm3, %v593_v16  ;;  %2396 = vmatprep.mubr.msk.f32.mxu1 %vm2816_vm1, %v2817_v8 }
 0x17a   : > { %2409 = vmatprep.subr.mxu0 %v2817_v8 }
 0x17c   : > { %v939_v17 = vpop.permute.xlu1 %938  ;;  %2402 = vmatmul.mubr.msk.f32.vlgmr.msra.gmra.mrb[0].mxu0 %vm419_vm3, %v591_v13  ;;  %v764_v18 = vpop.permute.xlu0 %763 }
 0x17d   : > { %2410 = vmatpush3.xpose.msk.msra.mxu0 %vm419_vm3, %v766_v15  ;;  %2411 = vmatprep.mubr.msk.f32.mxu0 %vm2816_vm1, %v2817_v8 }
 0x17e   : > { %2419 = vmatprep.subr.mxu0 %v2817_v8 }
 0x180   : > { %v1112_v19 = vpop.permute.xlu1 %1111  ;;  %2412 = vmatmul.mubr.msk.f32.vlgmr.msra.gmra.mrb[2].mxu0 %vm419_vm3, %v764_v18  ;;  %v937_v20 = vpop.permute.xlu0 %936 }
 0x181   : > { %2420 = vmatpush3.xpose.msk.msra.mxu0 %vm419_vm3, %v939_v17  ;;  %2421 = vmatprep.mubr.msk.f32.mxu0 %vm2816_vm1, %v2817_v8 }
 0x182   : > { %2429 = vmatprep.subr.mxu0 %v2817_v8 }
 0x184   : > { %v1285_v21 = vpop.permute.xlu1 %1284  ;;  %2422 = vmatmul.mubr.msk.f32.vlgmr.msra.gmra.mrb[4].mxu0 %vm419_vm3, %v937_v20  ;;  %v1110_v22 = vpop.permute.xlu0 %1109 }
 0x185   : > { %2430 = vmatpush3.xpose.msk.msra.mxu0 %vm419_vm3, %v1112_v19  ;;  %2431 = vmatprep.mubr.msk.f32.mxu0 %vm2816_vm1, %v2817_v8 }
 0x186   : > { %2439 = vmatprep.subr.mxu0 %v2817_v8 }
 0x188   : > { %2432 = vmatmul.mubr.msk.f32.vlgmr.msra.gmra.mrb[6].mxu0 %vm419_vm3, %v1110_v22  ;;  %v1283_v23 = vpop.permute.xlu0 %1282  ;;  %v1458_v24 = vpop.permute.xlu1 %1457 }
 0x189   : > { %2440 = vmatpush3.xpose.msk.msra.mxu0 %vm419_vm3, %v1285_v21  ;;  %2441 = vmatprep.mubr.msk.f32.mxu0 %vm2816_vm1, %v2817_v8 }
 0x18a   : > { %2449 = vmatprep.subr.mxu0 %v2817_v8 }
 0x18c   : > { %2442 = vmatmul.mubr.msk.f32.vlgmr.msra.gmra.mrb[8].mxu0 %vm419_vm3, %v1283_v23  ;;  %v1456_v25 = vpop.permute.xlu0 %1455  ;;  %v1631_v26 = vpop.permute.xlu1 %1630 }
 0x18d   : > { %2450 = vmatpush3.xpose.msk.msra.mxu0 %vm419_vm3, %v1458_v24  ;;  %2451 = vmatprep.mubr.msk.f32.mxu0 %vm2816_vm1, %v2817_v8 }
 0x18e   : > { %2459 = vmatprep.subr.mxu0 %v2817_v8 }
 0x190   : > { %2452 = vmatmul.mubr.msk.f32.vlgmr.msra.gmra.mrb[10].mxu0 %vm419_vm3, %v1456_v25  ;;  %v1629_v27 = vpop.permute.xlu0 %1628 }
 0x191   : > { %2460 = vmatpush3.xpose.msk.msra.mxu0 %vm419_vm3, %v1631_v26  ;;  %2461 = vmatprep.mubr.msk.f32.mxu0 %vm2816_vm1, %v2817_v8 }
 0x192   : > { %2544 = vmatprep.subr.bf16.mxu0 %v2815_v4 }
 0x194   : > { %2462 = vmatmul.mubr.msk.f32.vlgmr.msra.gmra.mrb[12].mxu0 %vm419_vm3, %v1629_v27 }
 0x195   : > { %2523 = vmatprep.mubr.msk.f32.mxu0 %vm2816_vm1, %v2817_v8 }
 0x24b   : > { %v490_v31 = vpop.f32.mrb[2].mxu1 }
 0x24c   : > { %v491_v32 = vadd.f32 %v490_v31, %v415_v30  ;;  %v2393_v33 = vpop.f32.mrb[3].mxu1 }
 0x24e   : > { %v495_v34 = vsel %vm494_vm4, %v491_v32, -inf }
 0x24f   : > { %v664_v35 = vpop.f32.mrb[0].mxu0  ;;  %496 = vmax.xlane.f32.xlu1 %v495_v34 }
 0x250   : > { %v665_v36 = vadd.f32 %v664_v35, %v415_v30  ;;  %v2403_v37 = vpop.f32.mrb[1].mxu0 }
 0x252   : > { %v668_v38 = vsel %vm494_vm4, %v665_v36, -inf }
 0x253   : > { %669 = vmax.xlane.f32.xlu0 %v668_v38  ;;  %v837_v39 = vpop.f32.mrb[2].mxu0 }
 0x254   : > { %v838_v40 = vadd.f32 %v837_v39, %v415_v30  ;;  %v2413_v41 = vpop.f32.mrb[3].mxu0 }
 0x256   : > { %v841_v42 = vsel %vm494_vm4, %v838_v40, -inf }
 0x257   : > { %842 = vmax.xlane.f32.xlu0 %v841_v42  ;;  %v1010_v43 = vpop.f32.mrb[4].mxu0 }
 0x258   : > { %v1011_v44 = vadd.f32 %v1010_v43, %v415_v30  ;;  %v2423_v45 = vpop.f32.mrb[5].mxu0 }
 0x25a   : > { %v1014_v46 = vsel %vm494_vm4, %v1011_v44, -inf }
 0x25b   : > { %v1183_v47 = vpop.f32.mrb[6].mxu0  ;;  %1015 = vmax.xlane.f32.xlu1 %v1014_v46 }
 0x25c   : > { %v1184_v48 = vadd.f32 %v1183_v47, %v415_v30  ;;  %v2433_v49 = vpop.f32.mrb[7].mxu0 }
 0x25e   : > { %v1187_v50 = vsel %vm494_vm4, %v1184_v48, -inf }
 0x25f   : > { %1188 = vmax.xlane.f32.xlu0 %v1187_v50  ;;  %v1356_v51 = vpop.f32.mrb[8].mxu0 }
 0x260   : > { %v3083_v52 = vadd.f32 %v1356_v51, %v415_v30  ;;  %v2443_v53 = vpop.f32.mrb[9].mxu0 }
 0x262   : > { %v1360_v54 = vsel %vm494_vm4, %v3083_v52, -inf }
 0x263   : > { %v1529_v55 = vpop.f32.mrb[10].mxu0  ;;  %1361 = vmax.xlane.f32.xlu1 %v1360_v54 }
 0x264   : > { %v3087_v56 = vadd.f32 %v1529_v55, %v415_v30  ;;  %v2453_v57 = vpop.f32.mrb[11].mxu0 }
 0x266   : > { %v1533_v58 = vsel %vm494_vm4, %v3087_v56, -inf }
 0x267   : > { %1534 = vmax.xlane.f32.xlu0 %v1533_v58  ;;  %v1702_v59 = vpop.f32.mrb[12].mxu0 }
 0x268   : > { %v3091_v60 = vadd.f32 %v1702_v59, %v415_v30  ;;  %v2463_v61 = vpop.f32.mrb[13].mxu0 }
 0x26a   : > { %v1706_v62 = vsel %vm494_vm4, %v3091_v60, -inf }
 0x274   : > { %687 = vrot.lane.b32.xlu1 %v3016_v11, %s2833_s7 }
 0x27d   : > { %514 = vrot.lane.b32.xlu0 %v3016_v11, %s2834_s20 }
 0x298   : > { %1707 = vmax.xlane.f32.xlu1 %v1706_v62 }
 0x2a9   : > { %860 = vrot.lane.b32.xlu1 %v3016_v11, %s2835_s21  ;;  %s3316_s21 = sand.u32 1, %s2789_s19  }
 0x2dc   : > { %v497_v63 = vpop.xlane.xlu1 %496 }
 0x2dd   : > { %v498_v0 = vsub.f32 %v491_v32, %v497_v63 }
 0x2df   : > { %v499_v6 = vmul.f32 1.442695, %v498_v0 }
 0x2e0   : > { %v670_v9 = vpop.xlane.xlu0 %669 }
 0x2e1   : > { %2683 = vpow2.f32 %v499_v6  ;;  %v671_v12 = vsub.f32 %v665_v36, %v670_v9 }
 0x2e3   : > { %v672_v13 = vmul.f32 1.442695, %v671_v12 }
 0x2e4   : > { %v843_v14 = vpop.xlane.xlu0 %842 }
 0x2e5   : > { %2685 = vpow2.f32 %v672_v13  ;;  %v844_v15 = vsub.f32 %v838_v40, %v843_v14 }
 0x2e7   : > { %v845_v16 = vmul.f32 1.442695, %v844_v15 }
 0x2e8   : > { %v1016_v17 = vpop.xlane.xlu1 %1015 }
 0x2e9   : > { %2687 = vpow2.f32 %v845_v16  ;;  %v1017_v18 = vsub.f32 %v1011_v44, %v1016_v17 }
 0x2eb   : > { %v2684_v19 = vpop.eup %2683  ;;  %v1018_v20 = vmul.f32 1.442695, %v1017_v18 }
 0x2ec   : > { %v1189_v21 = vpop.xlane.xlu0 %1188  ;;  %v3099_v22 = vmul.f32 %v2684_v19, %v3075_v28 }
 0x2ed   : > { %2689 = vpow2.f32 %v1018_v20  ;;  %v1190_v23 = vsub.f32 %v1184_v48, %v1189_v21 }
 0x2ee   : > { %v502_v24 = vsel %vm494_vm4, %v3099_v22, 0.0 }
 0x2ef   : > { %v2686_v25 = vpop.eup %2685  ;;  %v1191_v26 = vmul.f32 1.442695, %v1190_v23  ;;  %503 = vadd.xlane.f32.xlu0 %v502_v24 }
 0x2f0   : > { %v3104_v27 = vmul.f32 %v2686_v25, %v3075_v28  ;;  %v1362_v41 = vpop.xlane.xlu1 %1361 }
 0x2f1   : > { %2691 = vpow2.f32 %v1191_v26  ;;  %v1363_v42 = vsub.f32 %v3083_v52, %v1362_v41 }
 0x2f2   : > { %v675_v29 = vsel %vm494_vm4, %v3104_v27, 0.0 }
 0x2f3   : > { %v2688_v30 = vpop.eup %2687  ;;  %676 = vadd.xlane.f32.xlu1 %v675_v29  ;;  %v1364_v43 = vmul.f32 1.442695, %v1363_v42 }
 0x2f4   : > { %v1535_v31 = vpop.xlane.xlu0 %1534  ;;  %v3109_v32 = vmul.f32 %v2688_v30, %v3075_v28  ;;  %v688_v46 = vpop.permute.xlu1 %687 }
 0x2f5   : > { %v1536_v44 = vsub.f32 %v3087_v56, %v1535_v31  ;;  %2693 = vpow2.f32 %v1364_v43 }
 0x2f6   : > { %v848_v33 = vsel %vm494_vm4, %v3109_v32, 0.0 }
 0x2f7   : > { %v2690_v34 = vpop.eup %2689  ;;  %849 = vadd.xlane.f32.xlu0 %v848_v33  ;;  %v1537_v45 = vmul.f32 1.442695, %v1536_v44 }
 0x2f8   : > { %v515_v35 = vpop.permute.xlu0 %514  ;;  %v3114_v36 = vmul.f32 %v2690_v34, %v3075_v28 }
 0x2f9   : > { %2395 = vmatpush3.msra.mxu1 %v515_v35  ;;  %2695 = vpow2.f32 %v1537_v45 }
 0x2fa   : > { %v1021_v37 = vsel %vm494_vm4, %v3114_v36, 0.0  ;;  %2404 = vmatprep.subr.mxu1 %v2817_v8 }
 0x2fb   : > { %v2692_v38 = vpop.eup %2691  ;;  %1022 = vadd.xlane.f32.xlu1 %v1021_v37 }
 0x2fc   : > { %v3120_v39 = vmul.f32 %v2692_v38, %v3075_v28 }
 0x2fe   : > { %v1194_v40 = vsel %vm494_vm4, %v3120_v39, 0.0 }
 0x2ff   : > { %1195 = vadd.xlane.f32.xlu0 %v1194_v40  ;;  %v2694_v49 = vpop.eup %2693 }
 0x300   : > { %v3130_v51 = vmul.f32 %v2694_v49, %v3075_v28 }
 0x302   : > { %v1367_v52 = vsel %vm494_vm4, %v3130_v51, 0.0 }
 0x303   : > { %v2696_v53 = vpop.eup %2695 }
 0x304   : > { %v3135_v54 = vmul.f32 %v2696_v53, %v3075_v28 }
 0x306   : > { %v1540_v55 = vsel %vm494_vm4, %v3135_v54, 0.0 }
 0x30c   : > { %1206 = vrot.lane.b32.xlu1 %v3016_v11, %s2836_s24  ;;  %s2135_s24 = scalar_lea.sflag [#allocation3], %s3316_s21 }
 0x315   : > { %1033 = vrot.lane.b32.xlu0 %v3016_v11, %s2837_s28 }
 0x325   : > { %v1708_v47 = vpop.xlane.xlu1 %1707 }
 0x326   : > { %v1709_v48 = vsub.f32 %v3091_v60, %v1708_v47 }
 0x328   : > { %v1710_v50 = vmul.f32 1.442695, %v1709_v48 }
 0x329   : > { %v861_v59 = vpop.permute.xlu1 %860 }
 0x32a   : > { %2697 = vpow2.f32 %v1710_v50 }
 0x330   : > { %1368 = vadd.xlane.f32.xlu1 %v1367_v52 }
 0x334   : > { %v2698_v56 = vpop.eup %2697  ;;  %1541 = vadd.xlane.f32.xlu0 %v1540_v55 }
 0x335   : > { %v3140_v57 = vmul.f32 %v2698_v56, %v3075_v28 }
 0x337   : > { %v1713_v58 = vsel %vm494_vm4, %v3140_v57, 0.0 }
 0x338   : > { %1714 = vadd.xlane.f32.xlu1 %v1713_v58 }
 0x349   : > { %1552 = vrot.lane.b32.xlu1 %v3016_v11, %s2838_s29 }
 0x34a   : > { %1379 = vrot.lane.b32.xlu0 %v3016_v11, %s2839_s9 }
 0x34d   : > { %2674 = vrot.lane.b32.xlu1 %v2673_v5, %s2841_s11 }
 0x34e   : > { %1725 = vrot.lane.b32.xlu0 %v3016_v11, %s2840_s10 }
 0x37c   : > { %v504_v60 = vpop.xlane.xlu0 %503 }
 0x37d   : > { %2699 = vrcp.f32 %v504_v60  ;;  %vm509_vm5 = vcmp.gt.f32.partialorder %v504_v60, 0.0 }
 0x380   : > { %v677_v61 = vpop.xlane.xlu1 %676 }
 0x381   : > { %2701 = vrcp.f32 %v677_v61  ;;  %vm682_vm6 = vcmp.gt.f32.partialorder %v677_v61, 0.0 }
 0x384   : > { %v850_v28 = vpop.xlane.xlu0 %849 }
 0x385   : > { %2703 = vrcp.f32 %v850_v28  ;;  %vm855_vm7 = vcmp.gt.f32.partialorder %v850_v28, 0.0 }
 0x387   : > { %v2700_v62 = vpop.eup %2699 }
 0x388   : > { %v506_v63 = vmul.f32 %v2700_v62, %v504_v60  ;;  %v1023_v0 = vpop.xlane.xlu1 %1022 }
 0x389   : > { %2705 = vrcp.f32 %v1023_v0  ;;  %vm1028_vm8 = vcmp.gt.f32.partialorder %v1023_v0, 0.0 }
 0x38a   : > { %v507_v6 = vsub.f32 2.0, %v506_v63 }
 0x38b   : > { %v2702_v9 = vpop.eup %2701 }
 0x38c   : > { %v508_v12 = vmul.f32 %v2700_v62, %v507_v6  ;;  %v679_v13 = vmul.f32 %v2702_v9, %v677_v61  ;;  %v1196_v14 = vpop.xlane.xlu0 %1195  ;;  %v1207_v40 = vpop.permute.xlu1 %1206 }
 0x38d   : > { %2707 = vrcp.f32 %v1196_v14  ;;  %vm1201_vm9 = vcmp.gt.f32.partialorder %v1196_v14, 0.0 }
 0x38e   : > { %v510_v15 = vmul.f32 %v508_v12, %v3099_v22  ;;  %v680_v11 = vsub.f32 2.0, %v679_v13 }
 0x38f   : > { %v2704_v16 = vpop.eup %2703 }
 0x390   : > { %v513_v17 = vsel %vm509_vm5, %v510_v15, 0.0  ;;  %v681_v18 = vmul.f32 %v2702_v9, %v680_v11  ;;  %v852_v19 = vmul.f32 %v2704_v16, %v850_v28  ;;  %v1034_v34 = vpop.permute.xlu0 %1033  ;;  %vm1839_vm5 = vcmask 228352  }
 0x391   : > { %2397 = vmatmul.mubr.msk.f32.vlgmr.msra.gmra.mrb[4].mxu1 %vm494_vm4, %v513_v17 }
 0x392   : > { %v683_v20 = vmul.f32 %v681_v18, %v3104_v27  ;;  %v853_v21 = vsub.f32 2.0, %v852_v19  ;;  %2405 = vmatpush3.msra.mxu1 %v688_v46  ;;  %2406 = vmatprep.mubr.msk.f32.mxu1 %vm2816_vm1, %v2817_v8 }
 0x393   : > { %v2706_v23 = vpop.eup %2705  ;;  %2414 = vmatprep.subr.mxu1 %v2817_v8 }
 0x394   : > { %v686_v22 = vsel %vm682_vm6, %v683_v20, 0.0  ;;  %v854_v24 = vmul.f32 %v2704_v16, %v853_v21  ;;  %v1025_v25 = vmul.f32 %v2706_v23, %v1023_v0 }
 0x395   : > { %2407 = vmatmul.mubr.msk.f32.vlgmr.msra.gmra.mrb[6].mxu1 %vm494_vm4, %v686_v22 }
 0x396   : > { %v856_v26 = vmul.f32 %v854_v24, %v3109_v32  ;;  %v1026_v29 = vsub.f32 2.0, %v1025_v25  ;;  %2415 = vmatpush3.msra.mxu1 %v861_v59  ;;  %2416 = vmatprep.mubr.msk.f32.mxu1 %vm2816_vm1, %v2817_v8 }
 0x397   : > { %v2708_v27 = vpop.eup %2707  ;;  %2424 = vmatprep.subr.mxu1 %v2817_v8 }
 0x398   : > { %v859_v30 = vsel %vm855_vm7, %v856_v26, 0.0  ;;  %v1027_v31 = vmul.f32 %v2706_v23, %v1026_v29  ;;  %v1198_v33 = vmul.f32 %v2708_v27, %v1196_v14 }
 0x399   : > { %2417 = vmatmul.mubr.msk.f32.vlgmr.msra.gmra.mrb[8].mxu1 %vm494_vm4, %v859_v30 }
 0x39a   : > { %v1029_v35 = vmul.f32 %v1027_v31, %v3114_v36  ;;  %v1199_v37 = vsub.f32 2.0, %v1198_v33  ;;  %2425 = vmatpush3.msra.mxu1 %v1034_v34  ;;  %2426 = vmatprep.mubr.msk.f32.mxu1 %vm2816_vm1, %v2817_v8 }
 0x39b   : > { %2434 = vmatprep.subr.mxu1 %v2817_v8 }
 0x39c   : > { %v1032_v32 = vsel %vm1028_vm8, %v1029_v35, 0.0  ;;  %v1200_v38 = vmul.f32 %v2708_v27, %v1199_v37 }
 0x39d   : > { %2427 = vmatmul.mubr.msk.f32.vlgmr.msra.gmra.mrb[10].mxu1 %vm494_vm4, %v1032_v32 }
 0x39e   : > { %v1202_v41 = vmul.f32 %v1200_v38, %v3120_v39  ;;  %2435 = vmatpush3.msra.mxu1 %v1207_v40  ;;  %2436 = vmatprep.mubr.msk.f32.mxu1 %vm2816_vm1, %v2817_v8 }
 0x39f   : > { %2444 = vmatprep.subr.mxu1 %v2817_v8 }
 0x3a0   : > { %v1205_v36 = vsel %vm1201_vm9, %v1202_v41, 0.0 }
 0x3a1   : > { %2437 = vmatmul.mubr.msk.f32.vlgmr.msra.gmra.mrb[12].mxu1 %vm494_vm4, %v1205_v36 }
 0x3a2   : > { %2446 = vmatprep.mubr.msk.f32.mxu1 %vm2816_vm1, %v2817_v8 }
 0x3bd   : > { %v1369_v42 = vpop.xlane.xlu1 %1368 }
 0x3be   : > { %2709 = vrcp.f32 %v1369_v42  ;;  %vm1374_vm10 = vcmp.gt.f32.partialorder %v1369_v42, 0.0 }
 0x3c1   : > { %v1542_v43 = vpop.xlane.xlu0 %1541 }
 0x3c2   : > { %2711 = vrcp.f32 %v1542_v43  ;;  %vm1547_vm11 = vcmp.gt.f32.partialorder %v1542_v43, 0.0 }
 0x3c5   : > { %v1380_v44 = vpop.permute.xlu0 %1379  ;;  %v1715_v45 = vpop.xlane.xlu1 %1714 }
 0x3c6   : > { %2713 = vrcp.f32 %v1715_v45  ;;  %2445 = vmatpush3.msra.mxu1 %v1380_v44  ;;  %vm1720_vm12 = vcmp.gt.f32.partialorder %v1715_v45, 0.0 }
 0x3c7   : > { %2454 = vmatprep.subr.mxu1 %v2817_v8 }
 0x3c8   : > { %v2710_v39 = vpop.eup %2709 }
 0x3c9   : > { %v1371_v46 = vmul.f32 %v2710_v39, %v1369_v42  ;;  %v1553_v60 = vpop.permute.xlu1 %1552  ;;  %v1726_v63 = vpop.permute.xlu0 %1725 }
 0x3cb   : > { %v1372_v47 = vsub.f32 2.0, %v1371_v46 }
 0x3cc   : > { %v2712_v48 = vpop.eup %2711 }
 0x3cd   : > { %v1373_v49 = vmul.f32 %v2710_v39, %v1372_v47  ;;  %v1544_v50 = vmul.f32 %v2712_v48, %v1542_v43  ;;  %v2675_v6 = vpop.permute.xlu1 %2674 }
 0x3ce   : > { %v2677_v9 = vunpack.i.h.bf16 %v2675_v6  ;;  %v2676_v12 = vunpack.i.l.bf16 %v2675_v6  ;;  %v329_v6 = vld [vmem:[%s2972_s12 + $0x38] sm:$0xff] }
 0x3cf   : > { %v1375_v53 = vmul.f32 %v1373_v49, %v3130_v51  ;;  %v1545_v52 = vsub.f32 2.0, %v1544_v50 }
 0x3d0   : > { %v2714_v55 = vpop.eup %2713  ;;  %v2533_v13 = vpack.c.bf16 %v2677_v9, %v2676_v12  ;;  %v330_v12 = vld [vmem:[%s2972_s12 + $0x40] sm:$0xff] }
 0x3d1   : > { %v1378_v56 = vsel %vm1374_vm10, %v1375_v53, 0.0  ;;  %v1546_v58 = vmul.f32 %v2712_v48, %v1545_v52  ;;  %v1717_v59 = vmul.f32 %v2714_v55, %v1715_v45  ;;  %v317_v52 = vld [vmem:[%s2967_s23 + $0x18] sm:$0xff] }
 0x3d2   : > { %2447 = vmatmul.mubr.msk.f32.vlgmr.msra.gmra.mrb[14].mxu1 %vm494_vm4, %v1378_v56  ;;  %v321_v56 = vld [vmem:[%s2967_s23 + $0x38] sm:$0xff] }
 0x3d3   : > { %v1548_v61 = vmul.f32 %v1546_v58, %v3135_v54  ;;  %v1718_v28 = vsub.f32 2.0, %v1717_v59  ;;  %2455 = vmatpush3.msra.mxu1 %v1553_v60  ;;  %2456 = vmatprep.mubr.msk.f32.mxu1 %vm2816_vm1, %v2817_v8  ;;  %v322_v59 = vld [vmem:[%s2972_s12] sm:$0xff]  ;;  %v323_v60 = vld [vmem:[%s2972_s12 + $0x8] sm:$0xff] }
 0x3d4   : > { %2464 = vmatprep.subr.mxu1 %v2817_v8 }
 0x3d5   : > { %v1551_v51 = vsel %vm1547_vm11, %v1548_v61, 0.0  ;;  %v1719_v62 = vmul.f32 %v2714_v55, %v1718_v28  ;;  %v319_v55 = vld [vmem:[%s2967_s23 + $0x28] sm:$0xff]  ;;  %v324_v61 = vld [vmem:[%s2972_s12 + $0x10] sm:$0xff]  ;;  %v2545_v28 = vpack.c.bf16 %v323_v60, %v322_v59 }
 0x3d6   : > { %2457 = vmatmul.mubr.msk.f32.vlgmr.msra.gmra.mrb[16].mxu1 %vm494_vm4, %v1551_v51  ;;  %v2542_v58 = vpack.c.bf16 %v321_v56, %v319_v55  ;;  %v325_v51 = vld [vmem:[%s2972_s12 + $0x18] sm:$0xff] }
 0x3d7   : > { %v1721_v0 = vmul.f32 %v1719_v62, %v3140_v57  ;;  %2465 = vmatpush3.msra.mxu1 %v1726_v63  ;;  %2466 = vmatprep.mubr.msk.f32.mxu1 %vm2816_vm1, %v2817_v8  ;;  %v2678_v57 = vpack.i.bf16 %v2998_v7, %v2990_v3  ;;  %v2548_v62 = vpack.c.bf16 %v325_v51, %v324_v61  ;;  %v326_v63 = vld [vmem:[%s2972_s12 + $0x20] sm:$0xff] }
 0x3d8   : > { %2532 = vmatprep.subr.bf16.mxu1 %v2815_v4  ;;  %2546 = vmatpush3.bf16.msra.mxu0 %v2545_v28 }
 0x3d9   : > { %v1724_v54 = vsel %vm1720_vm12, %v1721_v0, 0.0  ;;  %2679 = vrot.lane.b32.xlu1 %v2678_v57, %s2841_s11  ;;  %2547 = vmatprep.subr.bf16.mxu0 %v2815_v4  ;;  %v327_v0 = vld [vmem:[%s2972_s12 + $0x28] sm:$0xff]  ;;  %v328_v57 = vld [vmem:[%s2972_s12 + $0x30] sm:$0xff] }
 0x3da   : > { %2467 = vmatmul.mubr.msk.f32.vlgmr.msra.gmra.mrb[18].mxu1 %vm494_vm4, %v1724_v54  ;;  %v2551_v54 = vpack.c.bf16 %v327_v0, %v326_v63  ;;  %v2554_v9 = vpack.c.bf16 %v329_v6, %v328_v57 }
 0x3db   : > { %2477 = vmatprep.mubr.msk.f32.mxu1 %vm2816_vm1, %v2817_v8  ;;  %2534 = vmatpush3.bf16.msra.mxu1 %v2533_v13  ;;  %v331_v13 = vld [vmem:[%s2972_s12 + $0x48] sm:$0xff] }
 0x3dc   : > { %2535 = vmatprep.subr.bf16.mxu1 %v2815_v4  ;;  %2549 = vmatpush3.bf16.msra.mxu0 %v2548_v62 }
 0x3dd   : > { %2550 = vmatprep.subr.bf16.mxu0 %v2815_v4 }
 0x3e0   : > { %2552 = vmatpush3.bf16.msra.mxu0 %v2551_v54 }
 0x3e1   : > { %2553 = vmatprep.subr.bf16.mxu0 %v2815_v4 }
 0x3e4   : > { %2555 = vmatpush3.bf16.msra.mxu0 %v2554_v9 }
 0x3e5   : > { %2556 = vmatprep.subr.bf16.mxu0 %v2815_v4 }
 0x44b   : > { %v2680_v14 = vpop.permute.xlu1 %2679 }
 0x44c   : > { %v2682_v15 = vunpack.i.h.bf16 %v2680_v14  ;;  %v2681_v11 = vunpack.i.l.bf16 %v2680_v14  ;;  %v2557_v14 = vpack.c.bf16 %v331_v13, %v330_v12 }
 0x44e   : > { %v2536_v16 = vpack.c.bf16 %v2682_v15, %v2681_v11  ;;  %v332_v15 = vld [vmem:[%s2972_s12 + $0x50] sm:$0xff]  ;;  %v333_v11 = vld [vmem:[%s2972_s12 + $0x58] sm:$0xff]  ;;  %2558 = vmatpush3.bf16.msra.mxu0 %v2557_v14 }
 0x44f   : > { %2559 = vmatprep.subr.bf16.mxu0 %v2815_v4 }
 0x450   : > { %2537 = vmatpush3.bf16.msra.mxu1 %v2536_v16  ;;  %v2560_v16 = vpack.c.bf16 %v333_v11, %v332_v15 }
 0x451   : > { %2538 = vmatprep.subr.bf16.mxu1 %v2815_v4 }
 0x452   : > { %2561 = vmatpush3.bf16.msra.mxu0 %v2560_v16 }
 0x453   : > { %2562 = vmatprep.subr.bf16.mxu0 %v2815_v4 }
 0x464   : > { %v586_v1 = vpop.f32.mrb[4].mxu1 }
 0x465   : > { %v2398_v2 = vpop.f32.mrb[5].mxu1 }
 0x466   : > { %v335_v2 = vld [vmem:[%s2972_s12 + $0x68] sm:$0xff] }
 0x468   : > { %v759_v5 = vpop.f32.mrb[6].mxu1 }
 0x469   : > { %1802 = vrot.lane.b32.xlu0 %v759_v5, %s2842_s13  ;;  %v2408_v3 = vpop.f32.mrb[7].mxu1 }
 0x46c   : > { %v932_v7 = vpop.f32.mrb[8].mxu1 }
 0x46d   : > { %1806 = vrot.lane.b32.xlu1 %v932_v7, %s2843_s17  ;;  %v2418_v17 = vpop.f32.mrb[9].mxu1 }
 0x46e   : > { %v1945_v17 = vlaneseq }
 0x470   : > { %v1105_v18 = vpop.f32.mrb[10].mxu1 }
 0x471   : > { %1810 = vrot.lane.b32.xlu0 %v1105_v18, %s2844_s26  ;;  %v2428_v19 = vpop.f32.mrb[11].mxu1 }
 0x472   : > { %v1946_v19 = vshrl.u32 %v1945_v17, 7 }
 0x474   : > { %v1278_v20 = vpop.f32.mrb[12].mxu1  ;;  %v2130_v55 = vsub.s32 3, %v1946_v19 }
 0x475   : > { %1814 = vrot.lane.b32.xlu0 %v1278_v20, %s2845_s27  ;;  %v2438_v21 = vpop.f32.mrb[13].mxu1  ;;  %v1947_v20 = vsub.s32 0, %v1946_v19 }
 0x476   : > { %v338_v21 = vld [vmem:[%s2977_s0] sm:$0xff]  ;;  %s2309_s0 = sshll.u32 %s2801_s22, 7  ;;  %s2849_s22 = smov [#allocation2]  }
 0x477   : > { %v2131_v60 = vrot.slane %v338_v21, %v2130_v55  ;;  %s3238_s20 = scalar_lea.hbm %s3300_s5, %s2309_s0  ;;  %s2723_s29 = sshll.u32 %s2849_s22, 4  ;;  %s2724_s29 = int_to_ptr.vmem [resolvable:$false] %s2723_s29 }
 0x478   : > { %s2725_s9 = scalar_lea.vmem %s2724_s29, 256 }
 0x4a5   : > { %v1451_v23 = vpop.f32.mrb[14].mxu1 }
 0x4a6   : > { %1818 = vrot.lane.b32.xlu1 %v1451_v23, %s2846_s8  ;;  %v2448_v22 = vpop.f32.mrb[15].mxu1  ;;  %v1952_v23 = vsub.s32 1, %v1946_v19 }
 0x4a7   : > { %v1948_v22 = vrot.slane %v338_v21, %v1947_v20 }
 0x4a9   : > { %v1624_v24 = vpop.f32.mrb[16].mxu1 }
 0x4aa   : > { %1822 = vrot.lane.b32.xlu0 %v1624_v24, %s2847_s15  ;;  %v2458_v25 = vpop.f32.mrb[17].mxu1 }
 0x4ad   : > { %v1797_v26 = vpop.f32.mrb[18].mxu1 }
 0x4ae   : > { %1826 = vrot.lane.b32.xlu1 %v1797_v26, %s2848_s16  ;;  %v2468_v29 = vpop.f32.mrb[19].mxu1  ;;  %v1953_v26 = vrot.slane %v338_v21, %v1952_v23 }
 0x4db   : > { %v1803_v27 = vpop.permute.xlu0 %1802 }
 0x4dc   : > { %v1829_v34 = vsel %vm419_vm3, %v586_v1, %v1803_v27  ;;  %v334_v1 = vld [vmem:[%s2972_s12 + $0x60] sm:$0xff] }
 0x4dd   : > { %v2563_v5 = vpack.c.bf16 %v335_v2, %v334_v1 }
 0x4df   : > { %v1807_v31 = vpop.permute.xlu1 %1806  ;;  %2564 = vmatpush3.bf16.msra.mxu0 %v2563_v5 }
 0x4e0   : > { %v1830_v35 = vsel %vm494_vm4, %v1829_v34, %v1807_v31  ;;  %2565 = vmatprep.subr.bf16.mxu0 %v2815_v4 }
 0x4e3   : > { %v1811_v30 = vpop.permute.xlu0 %1810 }
 0x4e4   : > { %v1832_v32 = vsel %vm1831_vm13, %v1830_v35, %v1811_v30  ;;  %v337_v30 = vld [vmem:[%s2972_s12 + $0x78] sm:$0xff] }
 0x4e7   : > { %v1815_v33 = vpop.permute.xlu0 %1814 }
 0x4e8   : > { %v1834_v40 = vsel %vm1833_vm14, %v1832_v32, %v1815_v33  ;;  %v1957_v33 = vsub.s32 5, %v1946_v19 }
 0x4ea   : > { %v1958_v34 = vrot.slane %v338_v21, %v1957_v33 }
 0x518   : > { %v1819_v37 = vpop.permute.xlu1 %1818 }
 0x519   : > { %v1836_v41 = vsel %vm1835_vm15, %v1834_v40, %v1819_v37 }
 0x51c   : > { %v1823_v38 = vpop.permute.xlu0 %1822 }
 0x51d   : > { %v1838_v36 = vsel %vm1837_vm0, %v1836_v41, %v1823_v38  ;;  %v2037_v41 = vsub.s32 4, %v1946_v19 }
 0x520   : > { %v1827_v42 = vpop.permute.xlu1 %1826 }
 0x521   : > { %v1840_v43 = vsel %vm1839_vm5, %v1838_v36, %v1827_v42  ;;  %v2038_v36 = vrot.slane %v338_v21, %v2037_v41 }
 0x522   : > { %2478 = vmatmul.mubr.msk.f32.vlgmr.msra.gmra.mrb[20].mxu1 %vm339_vm2, %v1840_v43 }
 0x523   : > { %2488 = vmatprep.mubr.msk.f32.mxu1 %vm2816_vm1, %v2817_v8  ;;  %v315_v8 = vld [vmem:[%s2967_s23 + $0x8] sm:$0xff]  ;;  %s2148_s23 = sshll.u32 %s2979_s14, 4  ;;  %s3240_s23 = int_to_ptr.vmem [resolvable:$true] %s2148_s23 }
 0x524   : > { %s2719_s28 = scalar_lea.vmem %s3240_s23, 128  ;;  %p2726_p5 = scmp.lt.s32.totalorder %s3240_s23, %s2724_s29 }
 0x525   : > { %p2720_p1 = scmp.ne.s32.totalorder %s3240_s23, %s2719_s28  ;;  %p2727_p6 = scmp.lt.s32.totalorder %s2725_s9, %s2719_s28 }
 0x527   : > { %p2721_p2 = pnand %p2720_p1, %p2929_p3  ;;  %p2728_p7 = por %p2727_p6, %p2726_p5 }
 0x529   : > { %p2722_p4 = pneg %p2721_p2 }
 0x52b   : > { %p2729_p8 = pnand %p2728_p7, %p2722_p4 }
 0x5f5   : > { %v1926_v44 = vpop.f32.mrb[20].mxu1 }
 0x5f6   : > { %v1930_v45 = vadd.f32 %v1926_v44, %v3009_v10  ;;  %v2479_v39 = vpop.f32.mrb[21].mxu1  ;;  %v2539_v10 = vpack.c.bf16 %v317_v52, %v315_v8 }
 0x5f8   : > { %v1931_v46 = vsel %vm339_vm2, %v1930_v45, 0.0  ;;  %2540 = vmatpush3.bf16.msra.mxu1 %v2539_v10  ;;  %v2125_v10 = vsub.s32 2, %v1946_v19 }
 0x5f9   : > { %1932 = vadd.xlane.f32.xlu0 %v1931_v46  ;;  %2541 = vmatprep.subr.bf16.mxu1 %v2815_v4  ;;  %v336_v4 = vld [vmem:[%s2972_s12 + $0x70] sm:$0xff] }
 0x5fa   : > { %v2566_v31 = vpack.c.bf16 %v337_v30, %v336_v4  ;;  %v2126_v56 = vrot.slane %v338_v21, %v2125_v10 }
 0x5fc   : > { %2543 = vmatpush3.bf16.msra.mxu1 %v2542_v58  ;;  %2567 = vmatpush3.bf16.msra.mxu0 %v2566_v31 }
 0x686   : > { %v1933_v47 = vpop.xlane.xlu0 %1932 }
 0x687   : > { %v1935_v48 = vmul.f32 0.03125, %v1933_v47 }
 0x689   : > { %v1936_v49 = vsub.f32 %v1930_v45, %v1935_v48 }
 0x68b   : > { %v1937_v50 = vmul.f32 %v1936_v49, %v1936_v49 }
 0x68d   : > { %v1938_v53 = vsel %vm339_vm2, %v1937_v50, 0.0 }
 0x68e   : > { %1939 = vadd.xlane.f32.xlu1 %v1938_v53 }
 0x71b   : > { %v1940_v3 = vpop.xlane.xlu1 %1939 }
 0x71c   : > { %v1941_v7 = vmul.f32 0.03125, %v1940_v3 }
 0x71e   : > { %v1942_v18 = vadd.f32 1e-06, %v1941_v7 }
 0x720   : > { %2715 = vrsqrt.f32 %v1942_v18 }
 0x72a   : > { %v2716_v24 = vpop.eup %2715 }
 0x72b   : > { %v1944_v25 = vmul.f32 %v2716_v24, %v1936_v49 }
 0x72d   : > { %v1949_v29 = vmul.f32 %v1948_v22, %v1944_v25 }
 0x72f   : > { %v1954_v27 = vadd.f32 %v1953_v26, %v1949_v29 }
 0x731   : > { %2489 = vmatmul.mubr.msk.f32.vlgmr.msra.gmra.mrb[22].mxu1 %vm339_vm2, %v1954_v27 }
 0x804   : > { %v2028_v35 = vpop.f32.mrb[22].mxu1 }
 0x805   : > { %v2029_v37 = vadd.f32 %v2028_v35, %v1958_v34  ;;  %v2490_v32 = vpop.f32.mrb[23].mxu1 }
 0x807   : > { %vm2032_vm1 = vcmp.ge.f32.partialorder %v2029_v37, 0.0  ;;  %v2033_v38 = vmul.f32 0.2, %v2029_v37 }
 0x809   : > { %v2034_v40 = vsel %vm2032_vm1, %v2029_v37, %v2033_v38 }
 0x80a   : > { %2524 = vmatmul.mubr.f32.vlgmr.msra.gmra.mrb[14].mxu0 %v2034_v40 }
 0x8dd   : > { %v2105_v42 = vpop.f32.mrb[14].mxu0 }
 0x8de   : > { %v2106_v43 = vadd.f32 %v2105_v42, %v2038_v36  ;;  %v2525_v44 = vpop.f32.mrb[15].mxu0 }
 0x8e0   : > { %v2109_v45 = vadd.f32 %v2106_v43, %v1954_v27 }
 0x8e2   : > { %v2110_v39 = vsel %vm339_vm2, %v2109_v45, 0.0 }
 0x8e3   : > { %2111 = vadd.xlane.f32.xlu0 %v2110_v39 }
 0x970   : > { %v2112_v46 = vpop.xlane.xlu0 %2111 }
 0x971   : > { %v2113_v47 = vmul.f32 0.03125, %v2112_v46 }
 0x973   : > { %v2114_v48 = vsub.f32 %v2109_v45, %v2113_v47 }
 0x975   : > { %v2115_v49 = vmul.f32 %v2114_v48, %v2114_v48 }
 0x977   : > { %v2116_v50 = vsel %vm339_vm2, %v2115_v49, 0.0 }
 0x978   : > { %2117 = vadd.xlane.f32.xlu0 %v2116_v50 }
 0xa05   : > { %v2118_v53 = vpop.xlane.xlu0 %2117 }
 0xa06   : > { %v2119_v8 = vmul.f32 0.03125, %v2118_v53 }
 0xa08   : > { %v2120_v52 = vadd.f32 1e-06, %v2119_v8 }
 0xa0a   : > { %2717 = vrsqrt.f32 %v2120_v52 }
 0xa14   : > { %v2718_v58 = vpop.eup %2717 }
 0xa15   : > { %v2122_v59 = vmul.f32 %v2718_v58, %v2114_v48 }
 0xa17   : > { %v2127_v61 = vmul.f32 %v2126_v56, %v2122_v59 }
 0xa19   : > { %v2132_v28 = vadd.f32 %v2131_v60, %v2127_v61 }
 0xa1b   : > { %2133 = vst.msk [vmem:[%s2979_s14] sm:$0xff] %vm339_vm2, %v2132_v28 }
 0xa1c   : > { %2732 = shalt.err (!%p2729_p8)
}
 0xa1d   : > { %s2733_s14 = scalar_lea.hbm %s3238_s20, 128  ;;  %s2737_s13 = scalar_lea.hbm %s3300_s5, 256 }
 0xa1e   : > { %p2734_p10 = scmp.ne.s32.totalorder %s3238_s20, %s2733_s14  ;;  %p2738_p13 = scmp.lt.u32.totalorder %s3238_s20, %s3300_s5 }
 0xa1f   : > { %p2739_p0 = scmp.lt.u32.totalorder %s2737_s13, %s2733_s14  ;;  %p2741_p2 = scmp.lt.u32.totalorder %s2733_s14, %s3238_s20 }
 0xa20   : > { %p2735_p11 = pnand %p2734_p10, %p2929_p3 }
 0xa21   : > { %p2740_p1 = por %p2739_p0, %p2738_p13 }
 0xa22   : > { %p2736_p12 = pneg %p2735_p11 }
 0xa23   : > { %p2742_p4 = por %p2741_p2, %p2740_p1 }
 0xa25   : > { %p2743_p5 = pnand %p2742_p4, %p2736_p12 }
 0xa27   : > { %2746 = shalt.err (!%p2743_p5)
}
 0xa28   : > { %2568 = dma.vmem_to_hbm [thread:$0]  (%p2929_p3), %s3240_s23, 128, %s3238_s20, %s2135_s24  }
 0xa29 PF: > { %p2574_p6 = scmp.ge.s32.totalorder %s2813_s25, 2  ;;  %s2160_s27 = sand.u32 1, %s2785_s18  }
 0xa2a   : > { %s2161_s8 = scalar_lea.sflag [#allocation3], %s2160_s27 }
 0xa2b   : > { %p2571_p7 = pnand %p2574_p6, %p2939_p9 }
 0xa2d   : > { %2780 = dma.done.wait (!%p2571_p7), %s2161_s8, 128  }
 0xa2e   : > { %2782 = vsyncadd (!%p2571_p7), %s2161_s8, 4294967168  ;;  %s18_s25 = sadd.s32 1, %s2813_s25   ;;  %s3317_s15 = sld [smem:[#allocation5_spill]] }
 0xa2f   : > { %p15_p8 = scmp.ge.s32.totalorder %s18_s25, 6   ;;  %s3318_s20 = sld [smem:[#allocation10_spill]] }
 0xa30   : > { %s3319_s21 = sld [smem:[#allocation6_spill]]  ;;  %s3320_s22 = sld [smem:[#allocation7_spill]] }
 0xa31   : > { %s3321_s23 = sld [smem:[#allocation8_spill]]  ;;  %s3322_s24 = sld [smem:[#allocation9_spill]] }
 0xa32   : > { %s3323_s18 = smov %s2789_s19  ;;  %17 = sbr.rel (!%p15_p8) target bundleno = 7 (0x7), region = 91 }
 0xa34   : > { %s3324_s19 = smov %s3317_s15 }
 0xa39   :  { %2166 = vsyncpa [#allocation3], 1 }
 0xa3a   :  { %2168 = vsyncpa [#allocation3 + $0x1], 1 }

</bundles_post_ra>
